<compile_context>
chip_gen: v7x
topology: tpu7x:2x2x1
jax: 0.10.0
libtpu: 0.0.40
codegen_flags: <defaults>
</compile_context>

<pallas_src>
import jax
import jax.numpy as jnp
from jax.experimental import pallas as pl
from jax.experimental.pallas import tpu as pltpu

BN_EPS = 1e-5
IN_DIM = 512     # fixed by the module (Linear(512, 2z) ... Linear(512, 512))
Z_PAD = 128      # z dimension padded to one full 128-lane vreg
TN = 128         # N tile of the final Linear(512, 512)


def vae_kernel(x_ref, w_enc_ref, b_enc_ref, bn1_w_ref, bn1_b_ref,
               wd1_ref, bd1_ref, bn2_w_ref, bn2_b_ref,
               wd2_ref, bd2_ref,
               out_ref, kl_ref, h_ref):
    # ---- step 0 only: encode -> BN1 -> reparameterize -> wd1 -> BN2 -> ReLU
    #      (result kept in VMEM scratch `h_ref`), plus the KL scalar. ----
    @pl.when(pl.program_id(0) == 0)
    def _():
        x = x_ref[...]                                                    # [B, 512] f32

        # fused encoder: one matmul, mu/logvar from 128-lane-aligned slices
        enc = jnp.dot(x, w_enc_ref[...],
                      preferred_element_type=jnp.float32) + b_enc_ref[...]  # [B, 2*Z_PAD]
        mu = enc[:, :Z_PAD]                                               # [B, Z_PAD]
        lv = enc[:, Z_PAD:]                                               # [B, Z_PAD]

        # BatchNorm1d(z), training mode, biased variance, single-pass stats.
        m1 = jnp.mean(mu, axis=0, keepdims=True)
        v1 = jnp.mean(mu * mu, axis=0, keepdims=True) - m1 * m1
        mu_bn = (mu - m1) * jax.lax.rsqrt(v1 + BN_EPS) * bn1_w_ref[...] + bn1_b_ref[...]

        # reparameterize: bn(mu) + exp(logvar)   (eps drawn but unused in torch)
        ev = jnp.exp(lv)                                                  # reused below
        z_q = mu_bn + ev

        # decode stage 1: Linear(z,512) -> BN(512) -> ReLU  (bf16 weights)
        h = jnp.dot(z_q.astype(wd1_ref.dtype), wd1_ref[...],
                    preferred_element_type=jnp.float32) + bd1_ref[...]    # [B, 512]
        m2 = jnp.mean(h, axis=0, keepdims=True)
        v2 = jnp.mean(h * h, axis=0, keepdims=True) - m2 * m2
        h = (h - m2) * jax.lax.rsqrt(v2 + BN_EPS) * bn2_w_ref[...] + bn2_b_ref[...]
        h = jnp.maximum(h, 0.0)
        h_ref[...] = h.astype(h_ref.dtype)                                # persists across grid

        # KL = sum(0.5*(mu^2 + exp(logvar)^2 - 1) - logvar), pre-BN mu.
        # Padded lanes contribute exactly 0 (mu=0, logvar=0).
        kl_terms = 0.5 * (mu * mu + ev * ev - 1.0) - lv                   # [B, Z_PAD]
        kl_row = jnp.sum(kl_terms, axis=1, keepdims=True)                 # [B, 1]
        kl_ref[...] = jnp.sum(kl_row, axis=0, keepdims=True)              # [1, 1]

    # ---- every step: one 128-lane output tile of the final Linear(512,512),
    #      overlapping the next wd2 tile's DMA with this tile's compute. ----
    out_ref[...] = jnp.dot(h_ref[...], wd2_ref[...],
                           preferred_element_type=jnp.float32) + bd2_ref[...]


def vae_forward(x, pk):
    """x: [B, 512] f32, pk: packed/padded params -> (out [B, 512] f32, KL scalar)."""
    B = x.shape[0]
    n_tiles = IN_DIM // TN

    args = (x,
            pk["w_enc"], pk["b_enc"], pk["bn1_w"], pk["bn1_b"],
            pk["wd1"], pk["bd1"], pk["bn2_w"], pk["bn2_b"],
            pk["wd2"], pk["bd2"])

    flops = 2 * B * IN_DIM * (2 * Z_PAD) + 2 * B * Z_PAD * IN_DIM + 2 * B * IN_DIM * IN_DIM
    bytes_accessed = sum(int(a.nbytes) for a in args) + B * IN_DIM * 4 + 4

    grid_spec = pltpu.PrefetchScalarGridSpec(
        num_scalar_prefetch=0,
        grid=(n_tiles,),
        in_specs=[
            pl.BlockSpec((B, IN_DIM), lambda j: (0, 0)),           # x          (loaded once)
            pl.BlockSpec((IN_DIM, 2 * Z_PAD), lambda j: (0, 0)),   # w_enc      (loaded once)
            pl.BlockSpec((1, 2 * Z_PAD), lambda j: (0, 0)),        # b_enc
            pl.BlockSpec((1, Z_PAD), lambda j: (0, 0)),            # bn1_w
            pl.BlockSpec((1, Z_PAD), lambda j: (0, 0)),            # bn1_b
            pl.BlockSpec((Z_PAD, IN_DIM), lambda j: (0, 0)),       # wd1 (bf16)
            pl.BlockSpec((1, IN_DIM), lambda j: (0, 0)),           # bd1
            pl.BlockSpec((1, IN_DIM), lambda j: (0, 0)),           # bn2_w
            pl.BlockSpec((1, IN_DIM), lambda j: (0, 0)),           # bn2_b
            pl.BlockSpec((IN_DIM, TN), lambda j: (0, j)),          # wd2 (bf16, tiled over N)
            pl.BlockSpec((1, TN), lambda j: (0, j)),               # bd2 (tiled over N)
        ],
        out_specs=(
            pl.BlockSpec((B, TN), lambda j: (0, j)),               # out tile per step
            pl.BlockSpec((1, 1), lambda j: (0, 0)),                # KL (written at step 0)
        ),
        scratch_shapes=[pltpu.VMEM((B, IN_DIM), jnp.bfloat16)],    # ReLU'd hidden h
    )

    out, kl = pl.pallas_call(
        vae_kernel,
        out_shape=(jax.ShapeDtypeStruct((B, IN_DIM), jnp.float32),
                   jax.ShapeDtypeStruct((1, 1), jnp.float32)),
        grid_spec=grid_spec,
        compiler_params=pltpu.CompilerParams(dimension_semantics=("arbitrary",)),
        cost_estimate=pl.CostEstimate(flops=flops,
                                      transcendentals=B * Z_PAD,
                                      bytes_accessed=bytes_accessed),
    )(*args)
    return out, kl[0, 0]


def init_params(key, z_dim):
    """Logical (PyTorch-shaped) params: uniform +-1/sqrt(fan_in); BN affine = (1, 0)."""
    ks = jax.random.split(key, 3)

    def lin(k, fan_in, fan_out):
        bound = 1.0 / float(fan_in) ** 0.5
        kw, kb = jax.random.split(k)
        w = jax.random.uniform(kw, (fan_in, fan_out), jnp.float32, -bound, bound)
        b = jax.random.uniform(kb, (1, fan_out), jnp.float32, -bound, bound)
        return w, b

    w_enc, b_enc = lin(ks[0], IN_DIM, 2 * z_dim)      # Linear(512, 2*z)
    wd1, bd1 = lin(ks[1], z_dim, IN_DIM)              # Linear(z, 512)
    wd2, bd2 = lin(ks[2], IN_DIM, IN_DIM)             # Linear(512, 512)
    return dict(
        w_mu=w_enc[:, :z_dim], b_mu=b_enc[:, :z_dim],
        w_lv=w_enc[:, z_dim:], b_lv=b_enc[:, z_dim:],
        bn1_w=jnp.ones((1, z_dim), jnp.float32), bn1_b=jnp.zeros((1, z_dim), jnp.float32),
        wd1=wd1, bd1=bd1,
        bn2_w=jnp.ones((1, IN_DIM), jnp.float32), bn2_b=jnp.zeros((1, IN_DIM), jnp.float32),
        wd2=wd2, bd2=bd2,
    )


def pack_params(p, z_dim):
    """Pad z to 128 lanes, fuse the encoder halves, cast decode weights to bf16.

    Zero padding is exact: padded mu lanes are identically 0 (BN output 0),
    padded logvar lanes are 0 -> exp=1, but the matching wd1 rows are 0 so they
    never reach the decoder, and their KL contribution is 0.5*(0+1-1)-0 = 0.
    """
    assert z_dim <= Z_PAD
    zp = Z_PAD - z_dim
    w_enc = jnp.concatenate([jnp.pad(p["w_mu"], ((0, 0), (0, zp))),
                             jnp.pad(p["w_lv"], ((0, 0), (0, zp)))], axis=1)   # [512, 256]
    b_enc = jnp.concatenate([jnp.pad(p["b_mu"], ((0, 0), (0, zp))),
                             jnp.pad(p["b_lv"], ((0, 0), (0, zp)))], axis=1)   # [1, 256]
    return dict(
        w_enc=w_enc, b_enc=b_enc,
        bn1_w=jnp.pad(p["bn1_w"], ((0, 0), (0, zp))),
        bn1_b=jnp.pad(p["bn1_b"], ((0, 0), (0, zp))),
        wd1=jnp.pad(p["wd1"], ((0, zp), (0, 0))).astype(jnp.bfloat16),         # [128, 512]
        bd1=p["bd1"], bn2_w=p["bn2_w"], bn2_b=p["bn2_b"],
        wd2=p["wd2"].astype(jnp.bfloat16),                                     # [512, 512]
        bd2=p["bd2"],
    )


def vae_reference(x, p):
    """Pure-JAX f32 reference mirroring the PyTorch forward (training-mode BN)."""
    mu = x @ p["w_mu"] + p["b_mu"]
    logvar = x @ p["w_lv"] + p["b_lv"]
    m1 = mu.mean(0, keepdims=True)
    v1 = ((mu - m1) ** 2).mean(0, keepdims=True)
    mu_bn = (mu - m1) / jnp.sqrt(v1 + BN_EPS) * p["bn1_w"] + p["bn1_b"]
    z_q = mu_bn + jnp.exp(logvar)
    h = z_q @ p["wd1"] + p["bd1"]
    m2 = h.mean(0, keepdims=True)
    v2 = ((h - m2) ** 2).mean(0, keepdims=True)
    h = (h - m2) / jnp.sqrt(v2 + BN_EPS) * p["bn2_w"] + p["bn2_b"]
    h = jnp.maximum(h, 0.0)
    out = h @ p["wd2"] + p["bd2"]
    kl = jnp.sum(0.5 * (mu ** 2 + jnp.exp(logvar) ** 2 - 1.0) - logvar)
    return out, kl


if __name__ == "__main__":
    z_dim = 32
    batch = 8
    key = jax.random.PRNGKey(0)
    k_x, k_p = jax.random.split(key)
    x = jax.random.normal(k_x, (batch, IN_DIM), jnp.float32)
    params = init_params(k_p, z_dim)
    packed = pack_params(params, z_dim)

    out, kl = jax.block_until_ready(vae_forward(x, packed))

    out_ref, kl_ref = vae_reference(x, params)
    assert out.shape == (batch, IN_DIM) and kl.shape == ()
    # decoder runs in bf16 -> looser output tolerance than the pure-f32 reference
    assert jnp.allclose(out, out_ref, atol=5e-2, rtol=5e-2)
    # encoder / KL path stays f32 -> tight tolerance
    assert jnp.allclose(kl, kl_ref, atol=1e-2, rtol=1e-3)
    print("KERNEL_OK")
</pallas_src>

<mosaic_0001>
module attributes {stable_mosaic.version = 11 : i64} {
  func.func @vae_kernel(%arg0: i32, %arg1: memref<8x512xf32, #tpu.memory_space<vmem>>, %arg2: memref<512x256xf32, #tpu.memory_space<vmem>>, %arg3: memref<1x256xf32, #tpu.memory_space<vmem>>, %arg4: memref<1x128xf32, #tpu.memory_space<vmem>>, %arg5: memref<1x128xf32, #tpu.memory_space<vmem>>, %arg6: memref<128x512xbf16, #tpu.memory_space<vmem>>, %arg7: memref<1x512xf32, #tpu.memory_space<vmem>>, %arg8: memref<1x512xf32, #tpu.memory_space<vmem>>, %arg9: memref<1x512xf32, #tpu.memory_space<vmem>>, %arg10: memref<512x128xbf16, #tpu.memory_space<vmem>>, %arg11: memref<1x128xf32, #tpu.memory_space<vmem>>, %arg12: memref<8x128xf32, #tpu.memory_space<vmem>>, %arg13: memref<1x1xf32, #tpu.memory_space<vmem>>, %arg14: memref<8x512xbf16, #tpu.memory_space<vmem>>) attributes {dimension_semantics = [#tpu.dimension_semantics<arbitrary>], iteration_bounds = array<i64: 4>, scalar_prefetch = 0 : i64, scratch_operands = 1 : i64, tpu.core_type = #tpu.core_type<tc>, window_params = [{pipeline_mode = #tpu.pipeline_mode<synchronous>, transform_indices = @transform_0, window_bounds = array<i64: 8, 512>}, {pipeline_mode = #tpu.pipeline_mode<synchronous>, transform_indices = @transform_1, window_bounds = array<i64: 512, 256>}, {pipeline_mode = #tpu.pipeline_mode<synchronous>, transform_indices = @transform_2, window_bounds = array<i64: 1, 256>}, {pipeline_mode = #tpu.pipeline_mode<synchronous>, transform_indices = @transform_3, window_bounds = array<i64: 1, 128>}, {pipeline_mode = #tpu.pipeline_mode<synchronous>, transform_indices = @transform_4, window_bounds = array<i64: 1, 128>}, {pipeline_mode = #tpu.pipeline_mode<synchronous>, transform_indices = @transform_5, window_bounds = array<i64: 128, 512>}, {pipeline_mode = #tpu.pipeline_mode<synchronous>, transform_indices = @transform_6, window_bounds = array<i64: 1, 512>}, {pipeline_mode = #tpu.pipeline_mode<synchronous>, transform_indices = @transform_7, window_bounds = array<i64: 1, 512>}, {pipeline_mode = #tpu.pipeline_mode<synchronous>, transform_indices = @transform_8, window_bounds = array<i64: 1, 512>}, {transform_indices = @transform_9, window_bounds = array<i64: 512, 128>}, {transform_indices = @transform_10, window_bounds = array<i64: 1, 128>}, {transform_indices = @transform_11, window_bounds = array<i64: 8, 128>}, {pipeline_mode = #tpu.pipeline_mode<synchronous>, transform_indices = @transform_12, window_bounds = array<i64: 1, 1>}]} {
    %c0_i32 = arith.constant 0 : i32
    %0 = arith.cmpi eq, %arg0, %c0_i32 : i32
    %1 = arith.extui %0 : i1 to i32
    %c0_i32_0 = arith.constant 0 : i32
    %2 = arith.cmpi ne, %1, %c0_i32_0 : i32
    scf.if %2 {
      %c0_8 = arith.constant 0 : index
      %c0_9 = arith.constant 0 : index
      %10 = vector.load %arg1[%c0_8, %c0_9] : memref<8x512xf32, #tpu.memory_space<vmem>>, vector<8x512xf32>
      %c0_10 = arith.constant 0 : index
      %c0_11 = arith.constant 0 : index
      %11 = vector.load %arg2[%c0_10, %c0_11] : memref<512x256xf32, #tpu.memory_space<vmem>>, vector<512x256xf32>
      %cst_12 = arith.constant dense<0.000000e+00> : vector<8x256xf32>
      %12 = tpu.matmul %10, %11, %cst_12 {dimension_numbers = #tpu.dot_dimension_numbers<[1], [0], [0], [1], [0, 0, 1, 1], [], []>} : vector<8x512xf32>, vector<512x256xf32>, vector<8x256xf32> -> vector<8x256xf32>
      %c0_13 = arith.constant 0 : index
      %c0_14 = arith.constant 0 : index
      %13 = vector.load %arg3[%c0_13, %c0_14] : memref<1x256xf32, #tpu.memory_space<vmem>>, vector<1x256xf32>
      %14 = vector.broadcast %13 : vector<1x256xf32> to vector<8x256xf32>
      %15 = arith.addf %12, %14 : vector<8x256xf32>
      %16 = vector.extract_strided_slice %15 {offsets = [0, 0], sizes = [8, 128], strides = [1, 1]} : vector<8x256xf32> to vector<8x128xf32>
      %17 = vector.extract_strided_slice %15 {offsets = [0, 128], sizes = [8, 128], strides = [1, 1]} : vector<8x256xf32> to vector<8x128xf32>
      %cst_15 = arith.constant dense<0.000000e+00> : vector<128xf32>
      %18 = vector.multi_reduction <add>, %16, %cst_15 [0] : vector<8x128xf32> to vector<128xf32>
      %19 = vector.shape_cast %18 : vector<128xf32> to vector<1x128xf32>
      %cst_16 = arith.constant 8.000000e+00 : f32
      %20 = vector.broadcast %cst_16 : f32 to vector<1x128xf32>
      %21 = arith.divf %19, %20 : vector<1x128xf32>
      %22 = arith.mulf %16, %16 : vector<8x128xf32>
      %cst_17 = arith.constant dense<0.000000e+00> : vector<128xf32>
      %23 = vector.multi_reduction <add>, %22, %cst_17 [0] : vector<8x128xf32> to vector<128xf32>
      %24 = vector.shape_cast %23 : vector<128xf32> to vector<1x128xf32>
      %cst_18 = arith.constant 8.000000e+00 : f32
      %25 = vector.broadcast %cst_18 : f32 to vector<1x128xf32>
      %26 = arith.divf %24, %25 : vector<1x128xf32>
      %27 = arith.mulf %21, %21 : vector<1x128xf32>
      %28 = arith.subf %26, %27 : vector<1x128xf32>
      %29 = vector.broadcast %21 : vector<1x128xf32> to vector<8x128xf32>
      %30 = arith.subf %16, %29 : vector<8x128xf32>
      %cst_19 = arith.constant 9.99999974E-6 : f32
      %31 = vector.broadcast %cst_19 : f32 to vector<1x128xf32>
      %32 = arith.addf %28, %31 : vector<1x128xf32>
      %33 = math.rsqrt %32 : vector<1x128xf32>
      %34 = vector.broadcast %33 : vector<1x128xf32> to vector<8x128xf32>
      %35 = arith.mulf %30, %34 : vector<8x128xf32>
      %c0_20 = arith.constant 0 : index
      %c0_21 = arith.constant 0 : index
      %36 = vector.load %arg4[%c0_20, %c0_21] : memref<1x128xf32, #tpu.memory_space<vmem>>, vector<1x128xf32>
      %37 = vector.broadcast %36 : vector<1x128xf32> to vector<8x128xf32>
      %38 = arith.mulf %35, %37 : vector<8x128xf32>
      %c0_22 = arith.constant 0 : index
      %c0_23 = arith.constant 0 : index
      %39 = vector.load %arg5[%c0_22, %c0_23] : memref<1x128xf32, #tpu.memory_space<vmem>>, vector<1x128xf32>
      %40 = vector.broadcast %39 : vector<1x128xf32> to vector<8x128xf32>
      %41 = arith.addf %38, %40 : vector<8x128xf32>
      %42 = math.exp %17 : vector<8x128xf32>
      %43 = arith.addf %41, %42 : vector<8x128xf32>
      %44 = arith.truncf %43 : vector<8x128xf32> to vector<8x128xbf16>
      %c0_24 = arith.constant 0 : index
      %c0_25 = arith.constant 0 : index
      %45 = vector.load %arg6[%c0_24, %c0_25] : memref<128x512xbf16, #tpu.memory_space<vmem>>, vector<128x512xbf16>
      %cst_26 = arith.constant dense<0.000000e+00> : vector<8x512xf32>
      %46 = tpu.matmul %44, %45, %cst_26 {dimension_numbers = #tpu.dot_dimension_numbers<[1], [0], [0], [1], [0, 0, 1, 1], [], []>} : vector<8x128xbf16>, vector<128x512xbf16>, vector<8x512xf32> -> vector<8x512xf32>
      %c0_27 = arith.constant 0 : index
      %c0_28 = arith.constant 0 : index
      %47 = vector.load %arg7[%c0_27, %c0_28] : memref<1x512xf32, #tpu.memory_space<vmem>>, vector<1x512xf32>
      %48 = vector.broadcast %47 : vector<1x512xf32> to vector<8x512xf32>
      %49 = arith.addf %46, %48 : vector<8x512xf32>
      %cst_29 = arith.constant dense<0.000000e+00> : vector<512xf32>
      %50 = vector.multi_reduction <add>, %49, %cst_29 [0] : vector<8x512xf32> to vector<512xf32>
      %51 = vector.shape_cast %50 : vector<512xf32> to vector<1x512xf32>
      %cst_30 = arith.constant 8.000000e+00 : f32
      %52 = vector.broadcast %cst_30 : f32 to vector<1x512xf32>
      %53 = arith.divf %51, %52 : vector<1x512xf32>
      %54 = arith.mulf %49, %49 : vector<8x512xf32>
      %cst_31 = arith.constant dense<0.000000e+00> : vector<512xf32>
      %55 = vector.multi_reduction <add>, %54, %cst_31 [0] : vector<8x512xf32> to vector<512xf32>
      %56 = vector.shape_cast %55 : vector<512xf32> to vector<1x512xf32>
      %cst_32 = arith.constant 8.000000e+00 : f32
      %57 = vector.broadcast %cst_32 : f32 to vector<1x512xf32>
      %58 = arith.divf %56, %57 : vector<1x512xf32>
      %59 = arith.mulf %53, %53 : vector<1x512xf32>
      %60 = arith.subf %58, %59 : vector<1x512xf32>
      %61 = vector.broadcast %53 : vector<1x512xf32> to vector<8x512xf32>
      %62 = arith.subf %49, %61 : vector<8x512xf32>
      %cst_33 = arith.constant 9.99999974E-6 : f32
      %63 = vector.broadcast %cst_33 : f32 to vector<1x512xf32>
      %64 = arith.addf %60, %63 : vector<1x512xf32>
      %65 = math.rsqrt %64 : vector<1x512xf32>
      %66 = vector.broadcast %65 : vector<1x512xf32> to vector<8x512xf32>
      %67 = arith.mulf %62, %66 : vector<8x512xf32>
      %c0_34 = arith.constant 0 : index
      %c0_35 = arith.constant 0 : index
      %68 = vector.load %arg8[%c0_34, %c0_35] : memref<1x512xf32, #tpu.memory_space<vmem>>, vector<1x512xf32>
      %69 = vector.broadcast %68 : vector<1x512xf32> to vector<8x512xf32>
      %70 = arith.mulf %67, %69 : vector<8x512xf32>
      %c0_36 = arith.constant 0 : index
      %c0_37 = arith.constant 0 : index
      %71 = vector.load %arg9[%c0_36, %c0_37] : memref<1x512xf32, #tpu.memory_space<vmem>>, vector<1x512xf32>
      %72 = vector.broadcast %71 : vector<1x512xf32> to vector<8x512xf32>
      %73 = arith.addf %70, %72 : vector<8x512xf32>
      %cst_38 = arith.constant 0.000000e+00 : f32
      %74 = vector.broadcast %cst_38 : f32 to vector<8x512xf32>
      %75 = arith.maximumf %73, %74 : vector<8x512xf32>
      %76 = arith.truncf %75 : vector<8x512xf32> to vector<8x512xbf16>
      %c0_39 = arith.constant 0 : index
      %c0_40 = arith.constant 0 : index
      %77 = vector.load %arg14[%c0_39, %c0_40] : memref<8x512xbf16, #tpu.memory_space<vmem>>, vector<8x512xbf16>
      tpu.vector_store %arg14[%c0_39, %c0_40], %76 {strides = array<i32>} : memref<8x512xbf16, #tpu.memory_space<vmem>>, vector<8x512xbf16>,
      %78 = arith.mulf %16, %16 : vector<8x128xf32>
      %79 = arith.mulf %42, %42 : vector<8x128xf32>
      %80 = arith.addf %78, %79 : vector<8x128xf32>
      %cst_41 = arith.constant 1.000000e+00 : f32
      %81 = vector.broadcast %cst_41 : f32 to vector<8x128xf32>
      %82 = arith.subf %80, %81 : vector<8x128xf32>
      %cst_42 = arith.constant 5.000000e-01 : f32
      %83 = vector.broadcast %cst_42 : f32 to vector<8x128xf32>
      %84 = arith.mulf %83, %82 : vector<8x128xf32>
      %85 = arith.subf %84, %17 : vector<8x128xf32>
      %cst_43 = arith.constant dense<0.000000e+00> : vector<8xf32>
      %86 = vector.multi_reduction <add>, %85, %cst_43 [1] : vector<8x128xf32> to vector<8xf32>
      %87 = vector.shape_cast %86 : vector<8xf32> to vector<8x1xf32>
      %cst_44 = arith.constant dense<0.000000e+00> : vector<1xf32>
      %88 = vector.multi_reduction <add>, %87, %cst_44 [0] : vector<8x1xf32> to vector<1xf32>
      %89 = vector.shape_cast %88 : vector<1xf32> to vector<1x1xf32>
      %c0_45 = arith.constant 0 : index
      %c0_46 = arith.constant 0 : index
      %90 = vector.load %arg13[%c0_45, %c0_46] : memref<1x1xf32, #tpu.memory_space<vmem>>, vector<1x1xf32>
      tpu.vector_store %arg13[%c0_45, %c0_46], %89 {strides = array<i32>} : memref<1x1xf32, #tpu.memory_space<vmem>>, vector<1x1xf32>,
    } else {
    }
    %c0 = arith.constant 0 : index
    %c0_1 = arith.constant 0 : index
    %3 = vector.load %arg14[%c0, %c0_1] : memref<8x512xbf16, #tpu.memory_space<vmem>>, vector<8x512xbf16>
    %c0_2 = arith.constant 0 : index
    %c0_3 = arith.constant 0 : index
    %4 = vector.load %arg10[%c0_2, %c0_3] : memref<512x128xbf16, #tpu.memory_space<vmem>>, vector<512x128xbf16>
    %cst = arith.constant dense<0.000000e+00> : vector<8x128xf32>
    %5 = tpu.matmul %3, %4, %cst {dimension_numbers = #tpu.dot_dimension_numbers<[1], [0], [0], [1], [0, 0, 1, 1], [], []>} : vector<8x512xbf16>, vector<512x128xbf16>, vector<8x128xf32> -> vector<8x128xf32>
    %c0_4 = arith.constant 0 : index
    %c0_5 = arith.constant 0 : index
    %6 = vector.load %arg11[%c0_4, %c0_5] : memref<1x128xf32, #tpu.memory_space<vmem>>, vector<1x128xf32>
    %7 = vector.broadcast %6 : vector<1x128xf32> to vector<8x128xf32>
    %8 = arith.addf %5, %7 : vector<8x128xf32>
    %c0_6 = arith.constant 0 : index
    %c0_7 = arith.constant 0 : index
    %9 = vector.load %arg12[%c0_6, %c0_7] : memref<8x128xf32, #tpu.memory_space<vmem>>, vector<8x128xf32>
    tpu.vector_store %arg12[%c0_6, %c0_7], %8 {strides = array<i32>} : memref<8x128xf32, #tpu.memory_space<vmem>>, vector<8x128xf32>,
    return
  }
  func.func @transform_0(%arg0: i32) -> (i32, i32) {
    %c0_i32 = arith.constant 0 : i32
    %c0_i32_0 = arith.constant 0 : i32
    %c0_i32_1 = arith.constant 0 : i32
    return %c0_i32, %c0_i32_0 : i32, i32
  }
  func.func @transform_1(%arg0: i32) -> (i32, i32) {
    %c0_i32 = arith.constant 0 : i32
    %c0_i32_0 = arith.constant 0 : i32
    %c0_i32_1 = arith.constant 0 : i32
    return %c0_i32, %c0_i32_0 : i32, i32
  }
  func.func @transform_2(%arg0: i32) -> (i32, i32) {
    %c0_i32 = arith.constant 0 : i32
    %c0_i32_0 = arith.constant 0 : i32
    %c0_i32_1 = arith.constant 0 : i32
    return %c0_i32, %c0_i32_0 : i32, i32
  }
  func.func @transform_3(%arg0: i32) -> (i32, i32) {
    %c0_i32 = arith.constant 0 : i32
    %c0_i32_0 = arith.constant 0 : i32
    %c0_i32_1 = arith.constant 0 : i32
    return %c0_i32, %c0_i32_0 : i32, i32
  }
  func.func @transform_4(%arg0: i32) -> (i32, i32) {
    %c0_i32 = arith.constant 0 : i32
    %c0_i32_0 = arith.constant 0 : i32
    %c0_i32_1 = arith.constant 0 : i32
    return %c0_i32, %c0_i32_0 : i32, i32
  }
  func.func @transform_5(%arg0: i32) -> (i32, i32) {
    %c0_i32 = arith.constant 0 : i32
    %c0_i32_0 = arith.constant 0 : i32
    %c0_i32_1 = arith.constant 0 : i32
    return %c0_i32, %c0_i32_0 : i32, i32
  }
  func.func @transform_6(%arg0: i32) -> (i32, i32) {
    %c0_i32 = arith.constant 0 : i32
    %c0_i32_0 = arith.constant 0 : i32
    %c0_i32_1 = arith.constant 0 : i32
    return %c0_i32, %c0_i32_0 : i32, i32
  }
  func.func @transform_7(%arg0: i32) -> (i32, i32) {
    %c0_i32 = arith.constant 0 : i32
    %c0_i32_0 = arith.constant 0 : i32
    %c0_i32_1 = arith.constant 0 : i32
    return %c0_i32, %c0_i32_0 : i32, i32
  }
  func.func @transform_8(%arg0: i32) -> (i32, i32) {
    %c0_i32 = arith.constant 0 : i32
    %c0_i32_0 = arith.constant 0 : i32
    %c0_i32_1 = arith.constant 0 : i32
    return %c0_i32, %c0_i32_0 : i32, i32
  }
  func.func @transform_9(%arg0: i32) -> (i32, i32) {
    %c0_i32 = arith.constant 0 : i32
    %c0_i32_0 = arith.constant 0 : i32
    return %c0_i32, %arg0 : i32, i32
  }
  func.func @transform_10(%arg0: i32) -> (i32, i32) {
    %c0_i32 = arith.constant 0 : i32
    %c0_i32_0 = arith.constant 0 : i32
    return %c0_i32, %arg0 : i32, i32
  }
  func.func @transform_11(%arg0: i32) -> (i32, i32) {
    %c0_i32 = arith.constant 0 : i32
    %c0_i32_0 = arith.constant 0 : i32
    return %c0_i32, %arg0 : i32, i32
  }
  func.func @transform_12(%arg0: i32) -> (i32, i32) {
    %c0_i32 = arith.constant 0 : i32
    %c0_i32_0 = arith.constant 0 : i32
    %c0_i32_1 = arith.constant 0 : i32
    return %c0_i32, %c0_i32_0 : i32, i32
  }
}

</mosaic_0001>

<bundles_post_ra>
// kernel: tpu_custom_call.1
= control target key start
LH: loop header
LB: loop body
LE: loop exit
PB: predicated region body
PF: predicated region fallthrough
CT: control target
= control target key end

     0   :  { %s3125_s0 = inlined_call_operand.hbm [shape: f32[8,512], index: 0, kind: input, shape index: {}]   ;;  %s3126_s1 = inlined_call_operand.hbm [shape: f32[512,256], index: 1, kind: input, shape index: {}]   ;;  %s3127_s2 = inlined_call_operand.vmem [shape: f32[1,256], index: 2, kind: input, shape index: {}]   ;;  %s3128_s3 = inlined_call_operand.hbm [shape: f32[1,128], index: 3, kind: input, shape index: {}]   ;;  %s3129_s4 = inlined_call_operand.hbm [shape: f32[1,128], index: 4, kind: input, shape index: {}]   ;;  %s3130_s5 = inlined_call_operand.hbm [shape: bf16[128,512], index: 5, kind: input, shape index: {}]   ;;  %s3131_s6 = inlined_call_operand.vmem [shape: f32[1,512], index: 6, kind: input, shape index: {}]   ;;  %s3132_s7 = inlined_call_operand.vmem [shape: f32[1,512], index: 7, kind: input, shape index: {}]   ;;  %s3133_s8 = inlined_call_operand.vmem [shape: f32[1,512], index: 8, kind: input, shape index: {}]   ;;  %s3134_s9 = inlined_call_operand.hbm [shape: bf16[512,512], index: 9, kind: input, shape index: {}]   ;;  %s3135_s10 = inlined_call_operand.vmem [shape: f32[1,512], index: 10, kind: input, shape index: {}]   ;;  %s3136_s11 = inlined_call_operand.hbm [shape: f32[8,512], index: 11, kind: output, shape index: {0}]   ;;  %s3137_s12 = inlined_call_operand.hbm [shape: f32[1,1], index: 12, kind: output, shape index: {1}]  }
   0x1   :  { %3147 = sst [smem:[#allocation25_spill]] %s3132_s7 }
   0x2   :  { %3148 = sst [smem:[#allocation26_spill]] %s3133_s8 }
   0x3   :  { %3149 = sst [smem:[#allocation27_spill]] %s3136_s11 }
   0x4   :  { %3150 = sst [smem:[#allocation28_spill]] %s3137_s12 }
   0x5   :  { %18 = vsyncpa [#allocation4], 0 }
   0x6   :  { %19 = vsyncpa [#allocation7], 0 }
   0x7   :  { %20 = vsyncpa [#allocation10], 0 }
   0x8   :  { %21 = vsyncpa [#allocation13], 0 }
   0x9   :  { %23 = vsyncpa [#allocation13 + $0x1], 0 }
   0xa   :  { %24 = vsyncpa [#allocation5], 0 }
   0xb   :  { %26 = vsyncpa [#allocation5 + $0x1], 0 }
   0xc   :  { %27 = vsyncpa [#allocation16], 0  ;;  %s2678_s21 = smov 0   ;;  %s2680_s22 = smov 0  }
   0xd   :  { %s2682_s23 = smov 0   ;;  %s2684_s24 = smov 0  }
   0xe LB: > { %3151 = sst [smem:[#allocation23_spill]] %s2586_s21  ;;  %s2699_s25 = sadd.s32 4294967295, %s2598_s24   ;;  %s2598_s24 = sphi %s2684_s24, %s3186_s24   ;;  %s2594_s23 = sphi %s2682_s23, %s3185_s23   ;;  %s2590_s22 = sphi %s2680_s22, %s3184_s22   ;;  %s2586_s21 = sphi %s2678_s21, %s3183_s21  }
   0xf   : > { %s1838_s26 = sadd.s32 4294967294, %s2598_s24   ;;  %p242_p0 = scmp.ne.s32.totalorder %s2590_s22, %s2586_s21 }
  0x10   : > { %p3140_p1 = scmp.eq.s32.totalorder %s2699_s25, 0  ;;  %p298_p3 = scmp.eq.s32.totalorder %s1838_s26, 3 }
  0x11   : > { %p1839_p5 = scmp.ge.s32.totalorder %s2598_s24, 1  ;;  %p326_p7 = scmp.lt.s32.totalorder %s2598_s24, 5 }
  0x12   : > { %p2708_p4 = por %p3140_p1, %p242_p0  ;;  %p2713_p6 = por %p298_p3, %p242_p0 }
  0x13   : > { %p2719_p9 = pnand %p1839_p5, %p326_p7  ;;  %s2600_s30 = smov [#allocation6]  }
  0x14   : > { %s3152_s27 = scalar_select %p2708_p4, 1, 0 }
  0x15   : > { %s3153_s28 = scalar_select %p2713_p6, 1, 0 }
  0x16   : > { %s3155_s29 = scalar_select %p2719_p9, 1, 0 }
  0x17   : > { %3154 = sst [smem:[#allocation24_spill]] %s3153_s28  ;;  %s349_s13 = sshll.u32 %s2600_s30, 4  ;;  %s2723_s13 = int_to_ptr.vmem [resolvable:$true] %s349_s13 }
  0x18   : > { %p2143_p10 = pneg %p2719_p9  ;;  %s2601_s15 = smov [#allocation9]  }
  0x19   : > { %s377_s16 = sshll.u32 %s2601_s15, 4  ;;  %s2602_s17 = smov [#allocation3]   ;;  %s2733_s16 = int_to_ptr.vmem [resolvable:$true] %s377_s16 }
  0x1a   : > { %p2729_p11 = pnand %p2143_p10, %p3140_p1  ;;  %s2735_s18 = sshll.u32 %s2602_s17, 4  ;;  %s340_s18 = int_to_ptr.vmem [resolvable:$true] %s2735_s18 }
  0x1b   : > { %s2320_s26 = scalar_lea.hbm %s3126_s1, 16384 }
  0x1c   : > { %p2321_p12 = scmp.ne.s32.totalorder %s3126_s1, %s2320_s26  ;;  %p2745_p13 = pneg %p2729_p11 }
  0x1d   : > { %p2327_p5 = scmp.lt.u32.totalorder %s2320_s26, %s3126_s1 }
  0x1e   : > { %p2323_p0 = pnand %p2745_p13, %p2321_p12 }
  0x20   : > { %p2324_p3 = pneg %p2323_p0 }
  0x22   : > { %p2329_p7 = pnand %p2327_p5, %p2324_p3 }
  0x24   : > { %2332 = shalt.err (!%p2329_p7)
}
  0x25   : > { %s2333_s28 = scalar_lea.vmem %s2723_s13, 16384  ;;  %p2341_p2 = scmp.lt.s32.totalorder %s2723_s13, %s2723_s13 }
  0x26   : > { %p2334_p10 = scmp.ne.s32.totalorder %s2723_s13, %s2333_s28  ;;  %p2342_p6 = scmp.lt.s32.totalorder %s2333_s28, %s2333_s28 }
  0x28   : > { %p2336_p8 = pnand %p2334_p10, %p2745_p13  ;;  %p2343_p12 = por %p2342_p6, %p2341_p2 }
  0x2a   : > { %p2337_p1 = pneg %p2336_p8 }
  0x2c   : > { %p2344_p0 = pnand %p2343_p12, %p2337_p1 }
  0x2e   : > { %2347 = shalt.err (!%p2344_p0)
}
  0x2f   : > { %s3145_s19 = smov 256   ;;  %s2604_s20 = smov 16  }
  0x30   : > { %2149 = dma.hbm_to_vmem [thread:$0]  (!%p2729_p11), %s3126_s1, 16384, %s2723_s13, [#allocation7], %s3145_s19, %s3145_s19, %s2604_s20  }
  0x31   : > { %s2348_s28 = scalar_lea.hbm %s3129_s4, 16 }
  0x32   : > { %p2349_p1 = scmp.ne.s32.totalorder %s3129_s4, %s2348_s28  ;;  %p2355_p8 = scmp.lt.u32.totalorder %s2348_s28, %s3129_s4 }
  0x34   : > { %p2351_p2 = pnand %p2349_p1, %p2745_p13 }
  0x36   : > { %p2352_p6 = pneg %p2351_p2 }
  0x38   : > { %p2357_p3 = pnand %p2355_p8, %p2352_p6 }
  0x3a   : > { %2360 = shalt.err (!%p2357_p3)
}
  0x3b   : > { %s2361_s13 = scalar_lea.vmem %s2733_s16, 16  ;;  %s2368_s11 = scalar_lea.vmem %s2733_s16, 32 }
  0x3c   : > { %p2362_p5 = scmp.ne.s32.totalorder %s2733_s16, %s2361_s13  ;;  %p2369_p12 = scmp.lt.s32.totalorder %s2733_s16, %s2733_s16 }
  0x3d   : > { %p2370_p0 = scmp.lt.s32.totalorder %s2368_s11, %s2361_s13 }
  0x3e   : > { %p2364_p7 = pnand %p2362_p5, %p2745_p13 }
  0x3f   : > { %p2371_p1 = por %p2370_p0, %p2369_p12 }
  0x40   : > { %p2365_p10 = pneg %p2364_p7 }
  0x42   : > { %p2372_p2 = pnand %p2371_p1, %p2365_p10 }
  0x44   : > { %2375 = shalt.err (!%p2372_p2)
}
  0x45   : > { %2155 = dma.hbm_to_vmem [thread:$0]  (!%p2729_p11), %s3129_s4, 16, %s2733_s16, [#allocation10]  }
  0x46   : > { %s2376_s30 = scalar_lea.hbm %s3125_s0, 512 }
  0x47   : > { %p2377_p6 = scmp.ne.s32.totalorder %s3125_s0, %s2376_s30  ;;  %p2383_p5 = scmp.lt.u32.totalorder %s2376_s30, %s3125_s0 }
  0x49   : > { %p2379_p8 = pnand %p2377_p6, %p2745_p13 }
  0x4b   : > { %p2380_p3 = pneg %p2379_p8 }
  0x4d   : > { %p2385_p7 = pnand %p2383_p5, %p2380_p3 }
  0x4f   : > { %2388 = shalt.err (!%p2385_p7)
}
  0x50   : > { %s2389_s11 = scalar_lea.vmem %s340_s18, 512  ;;  %p2397_p1 = scmp.lt.s32.totalorder %s340_s18, %s340_s18 }
  0x51   : > { %p2390_p10 = scmp.ne.s32.totalorder %s340_s18, %s2389_s11  ;;  %p2398_p2 = scmp.lt.s32.totalorder %s2389_s11, %s2389_s11 }
  0x53   : > { %p2392_p12 = pnand %p2390_p10, %p2745_p13  ;;  %p2399_p4 = por %p2398_p2, %p2397_p1 }
  0x55   : > { %p2393_p0 = pneg %p2392_p12 }
  0x57   : > { %p2400_p9 = pnand %p2399_p4, %p2393_p0 }
  0x59   : > { %2403 = shalt.err (!%p2400_p9)
}
  0x5a   : > { %2146 = dma.hbm_to_vmem [thread:$0]  (!%p2729_p11), %s3125_s0, 512, %s340_s18, [#allocation4]  }
  0x5b   : > { %s2605_s8 = smov [#allocation8]   ;;  %s2606_s26 = smov [#allocation11]  }
  0x5c   : > { %s366_s12 = sshll.u32 %s2605_s8, 4  ;;  %s387_s30 = sshll.u32 %s2606_s26, 4  ;;  %s367_s12 = int_to_ptr.vmem [resolvable:$true] %s366_s12  ;;  %s388_s30 = int_to_ptr.vmem [resolvable:$true] %s387_s30 }
  0x5d   : > { %s2404_s28 = scalar_lea.hbm %s3128_s3, 16 }
  0x5e   : > { %p2405_p4 = scmp.ne.s32.totalorder %s3128_s3, %s2404_s28  ;;  %p2411_p8 = scmp.lt.u32.totalorder %s2404_s28, %s3128_s3 }
  0x60   : > { %p2407_p9 = pnand %p2405_p4, %p2745_p13 }
  0x62   : > { %p2408_p6 = pneg %p2407_p9 }
  0x64   : > { %p2413_p3 = pnand %p2411_p8, %p2408_p6 }
  0x66   : > { %2416 = shalt.err (!%p2413_p3)
}
  0x67   : > { %s2417_s18 = scalar_lea.vmem %s367_s12, 16  ;;  %s2424_s7 = scalar_lea.vmem %s367_s12, 32 }
  0x68   : > { %p2418_p5 = scmp.ne.s32.totalorder %s367_s12, %s2417_s18  ;;  %p2425_p12 = scmp.lt.s32.totalorder %s367_s12, %s367_s12 }
  0x69   : > { %p2426_p0 = scmp.lt.s32.totalorder %s2424_s7, %s2417_s18 }
  0x6a   : > { %p2420_p7 = pnand %p2418_p5, %p2745_p13 }
  0x6b   : > { %p2427_p1 = por %p2426_p0, %p2425_p12 }
  0x6c   : > { %p2421_p10 = pneg %p2420_p7 }
  0x6e   : > { %p2428_p2 = pnand %p2427_p1, %p2421_p10 }
  0x70   : > { %2431 = shalt.err (!%p2428_p2)
}
  0x71   : > { %2152 = dma.hbm_to_vmem [thread:$0]  (!%p2729_p11), %s3128_s3, 16, %s367_s12, [#allocation7]  }
  0x72   : > { %s2432_s17 = scalar_lea.hbm %s3130_s5, 4096 }
  0x73   : > { %p2433_p4 = scmp.ne.s32.totalorder %s3130_s5, %s2432_s17  ;;  %p2439_p8 = scmp.lt.u32.totalorder %s2432_s17, %s3130_s5 }
  0x75   : > { %p2435_p9 = pnand %p2433_p4, %p2745_p13 }
  0x77   : > { %p2436_p6 = pneg %p2435_p9 }
  0x79   : > { %p2441_p3 = pnand %p2439_p8, %p2436_p6 }
  0x7b   : > { %2444 = shalt.err (!%p2441_p3)
}
  0x7c   : > { %s2445_s18 = scalar_lea.vmem %s388_s30, 4096  ;;  %p2453_p12 = scmp.lt.s32.totalorder %s388_s30, %s388_s30 }
  0x7d   : > { %p2446_p5 = scmp.ne.s32.totalorder %s388_s30, %s2445_s18  ;;  %p2454_p0 = scmp.lt.s32.totalorder %s2445_s18, %s2445_s18 }
  0x7f   : > { %p2448_p7 = pnand %p2446_p5, %p2745_p13  ;;  %p2455_p1 = por %p2454_p0, %p2453_p12 }
  0x81   : > { %p2449_p10 = pneg %p2448_p7 }
  0x83   : > { %p2456_p2 = pnand %p2455_p1, %p2449_p10 }
  0x85   : > { %2459 = shalt.err (!%p2456_p2)
}
  0x86   : > { %s3158_s12 = smov 256   ;;  %s2852_s21 = sadd.s32 1, %s2598_s24  }
  0x87   : > { %2158 = dma.hbm_to_vmem [thread:$0]  (!%p2729_p11), %s3130_s5, 4096, %s388_s30, [#allocation10], %s3158_s12, %s3158_s12, %s2604_s20  }
  0x88   : > { %s226_s14 = ssub.s32 %s2598_s24, %s2852_s21  ;;  %s229_s26 = sadd.s32 1, %s2594_s23 }
  0x89   : > { %p227_p13 = scmp.eq.s32.totalorder %s226_s14, 0  ;;  %p236_p4 = scmp.ne.s32.totalorder %s2594_s23, %s2590_s22 }
  0x8a   : > { %p237_p9 = scmp.eq.s32.totalorder %s2598_s24, 0  ;;  %p2172_p6 = scmp.lt.s32.totalorder %s2598_s24, 4 }
  0x8b   : > { %s2862_s19 = scalar_select %p227_p13, %s2594_s23, %s229_s26  }
  0x8c   : > { %p238_p8 = por %p237_p9, %p236_p4  ;;  %p3159_p3 = scmp.eq.s32.totalorder %s2699_s25, 3 }
  0x8d   : > { %s410_s17 = sand.u32 1, %s2594_s23   ;;  %s1847_s28 = sshll.u32 %s2598_s24, 6 }
  0x8e   : > { %p2866_p5 = por %p3159_p3, %p236_p4  ;;  %s1846_s20 = sshll.u32 %s410_s17, 8 }
  0x8f   : > { %s2875_s11 = scalar_lea.hbm %s3134_s9, %s1847_s28  ;;  %s414_s16 = scalar_lea.vmem [#allocation12], %s1846_s20 }
  0x90   : > { %s420_s18 = sshll.u32 %s414_s16, 4  ;;  %p2877_p11 = pnand %p2172_p6, %p238_p8  ;;  %s2881_s18 = int_to_ptr.vmem [resolvable:$true] %s420_s18 }
  0x91   : > { %s2883_s8 = scalar_lea.sflag [#allocation13], %s410_s17  ;;  %s2460_s14 = scalar_lea.hbm %s2875_s11, 4096 }
  0x92   : > { %p2461_p7 = scmp.ne.s32.totalorder %s2875_s11, %s2460_s14  ;;  %p2462_p10 = pneg %p2877_p11 }
  0x93   : > { %s2465_s20 = scalar_lea.hbm %s3134_s9, 16384  ;;  %p2466_p1 = scmp.lt.u32.totalorder %s2875_s11, %s3134_s9 }
  0x94   : > { %p2463_p12 = pnand %p2462_p10, %p2461_p7  ;;  %p2467_p2 = scmp.lt.u32.totalorder %s2465_s20, %s2460_s14 }
  0x95   : > { %p2469_p4 = scmp.lt.u32.totalorder %s2460_s14, %s2875_s11 }
  0x96   : > { %p2464_p0 = pneg %p2463_p12  ;;  %p2468_p13 = por %p2467_p2, %p2466_p1 }
  0x98   : > { %p2470_p9 = por %p2469_p4, %p2468_p13 }
  0x9a   : > { %p2471_p6 = pnand %p2470_p9, %p2464_p0 }
  0x9c   : > { %2474 = shalt.err (!%p2471_p6)
}
  0x9d   : > { %s2475_s17 = scalar_lea.vmem %s2881_s18, 4096  ;;  %s2607_s16 = smov [#allocation12]  }
  0x9e   : > { %p2476_p8 = scmp.ne.s32.totalorder %s2881_s18, %s2475_s17  ;;  %s2480_s26 = sshll.u32 %s2607_s16, 4  ;;  %s2481_s26 = int_to_ptr.vmem [resolvable:$false] %s2480_s26 }
  0x9f   : > { %s2482_s28 = scalar_lea.vmem %s2481_s26, 8192  ;;  %p2483_p12 = scmp.lt.s32.totalorder %s2881_s18, %s2481_s26 }
  0xa0   : > { %p2478_p3 = pnand %p2476_p8, %p2462_p10  ;;  %p2484_p1 = scmp.lt.s32.totalorder %s2482_s28, %s2475_s17 }
  0xa2   : > { %p2479_p7 = pneg %p2478_p3  ;;  %p2485_p2 = por %p2484_p1, %p2483_p12 }
  0xa4   : > { %p2486_p13 = pnand %p2485_p2, %p2479_p7 }
  0xa6   : > { %2489 = shalt.err (!%p2486_p13)
}
  0xa7   : > { %s2608_s14 = smov 64   ;;  %s2609_s20 = smov 4  }
  0xa8   : > { %2162 = dma.hbm_to_vmem [thread:$0]  (!%p2877_p11), %s2875_s11, 4096, %s2881_s18, %s2883_s8, %s3158_s12, %s2608_s14, %s2609_s20  }
  0xa9   : > { %p3162_p10 = scmp.ne.s32.totalorder %s3155_s29, 0 }
  0xaa   : > { %p3163_p0 = scmp.eq.s32.totalorder (!%p3162_p10), %s2699_s25, 0 }
  0xab   : > { %438 = sbr.rel (%p3162_p10) target bundleno = 1139 (0x473), region = 64 }
  0xb2   : > { %2561 = dma.done.wait (%p3163_p0), [#allocation4], 512   ;;  %p3164_p4 = pmov %p3163_p0 }
  0xb3   : > { %p3165_p9 = pmov %p3163_p0 }
  0xb4   : > { %2563 = vsyncadd (%p3164_p4), [#allocation4], 4294966784 }
  0xb5   : > { %2565 = dma.done.wait (%p3165_p9), [#allocation7], 16400   ;;  %p3166_p6 = pmov %p3163_p0 }
  0xb6   : > { %p3167_p8 = pmov %p3163_p0 }
  0xb7   : > { %2567 = vsyncadd (%p3166_p6), [#allocation7], 4294950896 }
  0xb8   : > { %2569 = dma.done.wait (%p3167_p8), [#allocation10], 4112   ;;  %p3168_p11 = pmov %p3163_p0 }
  0xb9   : > { %s2927_s29 = sand.u32 1, %s2590_s22   ;;  %p3169_p3 = scmp.ne.s32.totalorder %s3152_s27, 0 }
  0xba   : > { %2571 = vsyncadd (%p3168_p11), [#allocation10], 4294963184  ;;  %s1854_s12 = sshll.u32 %s2927_s29, 8  ;;  %s461_s11 = scalar_lea.sflag [#allocation13], %s2927_s29 }
  0xbb   : > { %s2931_s18 = scalar_lea.vmem [#allocation12], %s1854_s12 }
  0xbc   : > { %2573 = dma.done.wait (%p3169_p3), %s461_s11, 4096  }
  0xbd   : > { %2575 = vsyncadd (%p3169_p3), %s461_s11, 4294963200  ;;  %s1855_s7 = sshll.u32 %s2927_s29, 3  ;;  %p508_p7 = scmp.lt.s32.totalorder %s2699_s25, 3 }
  0xbe   : > { %s2946_s16 = scalar_lea.vmem [#allocation14], %s1855_s7  ;;  %p3170_p12 = scmp.ne.s32.totalorder %s2699_s25, 0 }
  0xbf   : > { %s2940_s8 = scalar_select %p508_p7, %s2699_s25, 3 }
  0xc0   : > { %515 = sbr.rel (%p3170_p12) target bundleno = 867 (0x363), region = 92  ;;  %v521_v0 = vld [vmem:[#allocation6 + $0x8] sm:$0xff] (!%p3170_p12)  ;;  %v523_v1 = vld [vmem:[#allocation6 + $0x18] sm:$0xff] (!%p3170_p12)  ;;  %v520_v2 = vld [vmem:[#allocation6] sm:$0xff] (!%p3170_p12)  ;;  %vm1311_vm0 = vcmask (!%p3170_p12), 0   ;;  %s3171_s11 = sld [smem:[#allocation25_spill]] (!%p3170_p12) }
  0xc1   : > { %s510_s17 = scalar_lea.vmem %s3135_s10, %s2940_s8  ;;  %v1983_v3 = vpack.c.bf16 (!%p3170_p12), %v523_v1, %v521_v0  ;;  %v522_v4 = vld [vmem:[#allocation6 + $0x10] sm:$0xff] (!%p3170_p12)  ;;  %v525_v5 = vld [vmem:[#allocation6 + $0x28] sm:$0xff] (!%p3170_p12)  ;;  %v527_v6 = vld [vmem:[#allocation6 + $0x38] sm:$0xff] (!%p3170_p12)  ;;  %s3172_s13 = sld [smem:[#allocation26_spill]] (!%p3170_p12) }
  0xc2   : > { %v1985_v7 = vpack.c.bf16 (!%p3170_p12), %v522_v4, %v520_v2  ;;  %v1987_v8 = vpack.c.bf16 (!%p3170_p12), %v527_v6, %v525_v5  ;;  %v524_v9 = vld [vmem:[#allocation6 + $0x20] sm:$0xff] (!%p3170_p12)  ;;  %v526_v10 = vld [vmem:[#allocation6 + $0x30] sm:$0xff] (!%p3170_p12)  ;;  %v529_v11 = vld [vmem:[#allocation6 + $0x48] sm:$0xff] (!%p3170_p12) }
  0xc3   : > { %1984 = vmatprep.subr.bf16.mxu0 (!%p3170_p12), %v1983_v3  ;;  %v531_v12 = vld [vmem:[#allocation6 + $0x58] sm:$0xff] (!%p3170_p12)  ;;  %v1989_v13 = vpack.c.bf16 (!%p3170_p12), %v526_v10, %v524_v9  ;;  %v528_v15 = vld [vmem:[#allocation6 + $0x40] sm:$0xff] (!%p3170_p12)  ;;  %v530_v16 = vld [vmem:[#allocation6 + $0x50] sm:$0xff] (!%p3170_p12) }
  0xc4   : > { %1986 = vmatpush1.bf16.msra.mxu0 (!%p3170_p12), %v1985_v7  ;;  %v1991_v14 = vpack.c.bf16 (!%p3170_p12), %v531_v12, %v529_v11  ;;  %v533_v17 = vld [vmem:[#allocation6 + $0x68] sm:$0xff] (!%p3170_p12)  ;;  %v535_v18 = vld [vmem:[#allocation6 + $0x78] sm:$0xff] (!%p3170_p12)  ;;  %v1993_v19 = vpack.c.bf16 (!%p3170_p12), %v530_v16, %v528_v15  ;;  %v532_v21 = vld [vmem:[#allocation6 + $0x60] sm:$0xff] (!%p3170_p12) }
  0xc5   : > { %1988 = vmatprep.subr.bf16.mxu0 (!%p3170_p12), %v1987_v8  ;;  %v1995_v20 = vpack.c.bf16 (!%p3170_p12), %v535_v18, %v533_v17  ;;  %v534_v22 = vld [vmem:[#allocation6 + $0x70] sm:$0xff] (!%p3170_p12)  ;;  %v537_v23 = vld [vmem:[#allocation6 + $0x88] sm:$0xff] (!%p3170_p12)  ;;  %v539_v24 = vld [vmem:[#allocation6 + $0x98] sm:$0xff] (!%p3170_p12) }
  0xc6   : > { %v1997_v25 = vpack.c.bf16 (!%p3170_p12), %v534_v22, %v532_v21  ;;  %v1999_v26 = vpack.c.bf16 (!%p3170_p12), %v539_v24, %v537_v23  ;;  %v536_v27 = vld [vmem:[#allocation6 + $0x80] sm:$0xff] (!%p3170_p12)  ;;  %v538_v28 = vld [vmem:[#allocation6 + $0x90] sm:$0xff] (!%p3170_p12)  ;;  %v541_v29 = vld [vmem:[#allocation6 + $0xa8] sm:$0xff] (!%p3170_p12) }
  0xc7   : > { %v543_v30 = vld [vmem:[#allocation6 + $0xb8] sm:$0xff]  ;;  %v2001_v31 = vpack.c.bf16 %v538_v28, %v536_v27  ;;  %v540_v33 = vld [vmem:[#allocation6 + $0xa0] sm:$0xff]  ;;  %v542_v34 = vld [vmem:[#allocation6 + $0xb0] sm:$0xff] }
  0xc8   : > { %1990 = vmatpush1.bf16.msra.mxu0 %v1989_v13  ;;  %v2003_v32 = vpack.c.bf16 %v543_v30, %v541_v29  ;;  %v545_v35 = vld [vmem:[#allocation6 + $0xc8] sm:$0xff]  ;;  %v547_v36 = vld [vmem:[#allocation6 + $0xd8] sm:$0xff]  ;;  %v2005_v37 = vpack.c.bf16 %v542_v34, %v540_v33  ;;  %v544_v39 = vld [vmem:[#allocation6 + $0xc0] sm:$0xff] }
  0xc9   : > { %1992 = vmatprep.subr.bf16.mxu0 %v1991_v14  ;;  %v2007_v38 = vpack.c.bf16 %v547_v36, %v545_v35  ;;  %v546_v40 = vld [vmem:[#allocation6 + $0xd0] sm:$0xff]  ;;  %v517_v41 = vld [vmem:[#allocation3 + $0x8] sm:$0xff]  ;;  %v551_v43 = vld [vmem:[#allocation6 + $0xf8] sm:$0xff] }
  0xca   : > { %v549_v42 = vld [vmem:[#allocation6 + $0xe8] sm:$0xff]  ;;  %724 = vmatprep.mubr.f32.mxu0 %v517_v41  ;;  %v2009_v44 = vpack.c.bf16 %v546_v40, %v544_v39  ;;  %v548_v46 = vld [vmem:[#allocation6 + $0xe0] sm:$0xff]  ;;  %v550_v47 = vld [vmem:[#allocation6 + $0xf0] sm:$0xff] }
  0xcb   : > { %v2011_v45 = vpack.c.bf16 %v551_v43, %v549_v42  ;;  %v553_v48 = vld [vmem:[#allocation6 + $0x108] sm:$0xff]  ;;  %v555_v49 = vld [vmem:[#allocation6 + $0x118] sm:$0xff]  ;;  %v2013_v50 = vpack.c.bf16 %v550_v47, %v548_v46  ;;  %v552_v52 = vld [vmem:[#allocation6 + $0x100] sm:$0xff] }
  0xcc   : > { %1994 = vmatpush1.bf16.msra.mxu0 %v1993_v19  ;;  %v2015_v51 = vpack.c.bf16 %v555_v49, %v553_v48  ;;  %v554_v53 = vld [vmem:[#allocation6 + $0x110] sm:$0xff]  ;;  %v557_v54 = vld [vmem:[#allocation6 + $0x128] sm:$0xff]  ;;  %v559_v55 = vld [vmem:[#allocation6 + $0x138] sm:$0xff] }
  0xcd   : > { %1996 = vmatprep.subr.bf16.mxu0 %v1995_v20  ;;  %v2017_v56 = vpack.c.bf16 %v554_v53, %v552_v52  ;;  %v2019_v57 = vpack.c.bf16 %v559_v55, %v557_v54  ;;  %v556_v58 = vld [vmem:[#allocation6 + $0x120] sm:$0xff]  ;;  %v558_v59 = vld [vmem:[#allocation6 + $0x130] sm:$0xff]  ;;  %v561_v60 = vld [vmem:[#allocation6 + $0x148] sm:$0xff] }
  0xce   : > { %v563_v61 = vld [vmem:[#allocation6 + $0x158] sm:$0xff]  ;;  %v2021_v62 = vpack.c.bf16 %v558_v59, %v556_v58  ;;  %v560_v0 = vld [vmem:[#allocation6 + $0x140] sm:$0xff]  ;;  %v562_v1 = vld [vmem:[#allocation6 + $0x150] sm:$0xff] }
  0xcf   : > { %v2023_v63 = vpack.c.bf16 %v563_v61, %v561_v60  ;;  %v565_v2 = vld [vmem:[#allocation6 + $0x168] sm:$0xff]  ;;  %v567_v3 = vld [vmem:[#allocation6 + $0x178] sm:$0xff]  ;;  %v2025_v4 = vpack.c.bf16 %v562_v1, %v560_v0  ;;  %v564_v6 = vld [vmem:[#allocation6 + $0x160] sm:$0xff] }
  0xd0   : > { %1998 = vmatpush1.bf16.msra.mxu0 %v1997_v25  ;;  %v2027_v5 = vpack.c.bf16 %v567_v3, %v565_v2  ;;  %v566_v7 = vld [vmem:[#allocation6 + $0x170] sm:$0xff]  ;;  %v569_v8 = vld [vmem:[#allocation6 + $0x188] sm:$0xff]  ;;  %v571_v9 = vld [vmem:[#allocation6 + $0x198] sm:$0xff] }
  0xd1   : > { %2000 = vmatprep.subr.bf16.mxu0 %v1999_v26  ;;  %v568_v10 = vld [vmem:[#allocation6 + $0x180] sm:$0xff]  ;;  %v570_v11 = vld [vmem:[#allocation6 + $0x190] sm:$0xff]  ;;  %v2029_v12 = vpack.c.bf16 %v566_v7, %v564_v6  ;;  %v573_v13 = vld [vmem:[#allocation6 + $0x1a8] sm:$0xff]  ;;  %v2031_v15 = vpack.c.bf16 %v571_v9, %v569_v8 }
  0xd2   : > { %v575_v14 = vld [vmem:[#allocation6 + $0x1b8] sm:$0xff]  ;;  %v572_v16 = vld [vmem:[#allocation6 + $0x1a0] sm:$0xff]  ;;  %v574_v17 = vld [vmem:[#allocation6 + $0x1b0] sm:$0xff]  ;;  %v2033_v18 = vpack.c.bf16 %v570_v11, %v568_v10 }
  0xd3   : > { %v577_v19 = vld [vmem:[#allocation6 + $0x1c8] sm:$0xff]  ;;  %v579_v20 = vld [vmem:[#allocation6 + $0x1d8] sm:$0xff]  ;;  %v2035_v21 = vpack.c.bf16 %v575_v14, %v573_v13  ;;  %v576_v22 = vld [vmem:[#allocation6 + $0x1c0] sm:$0xff]  ;;  %v2037_v24 = vpack.c.bf16 %v574_v17, %v572_v16 }
  0xd4   : > { %2002 = vmatpush1.bf16.msra.mxu0 %v2001_v31  ;;  %v578_v23 = vld [vmem:[#allocation6 + $0x1d0] sm:$0xff]  ;;  %v581_v25 = vld [vmem:[#allocation6 + $0x1e8] sm:$0xff]  ;;  %v583_v26 = vld [vmem:[#allocation6 + $0x1f8] sm:$0xff]  ;;  %v2039_v27 = vpack.c.bf16 %v579_v20, %v577_v19 }
  0xd5   : > { %2004 = vmatprep.subr.bf16.mxu0 %v2003_v32  ;;  %v2041_v28 = vpack.c.bf16 %v578_v23, %v576_v22  ;;  %v2043_v29 = vpack.c.bf16 %v583_v26, %v581_v25  ;;  %v580_v30 = vld [vmem:[#allocation6 + $0x1e0] sm:$0xff]  ;;  %v582_v31 = vld [vmem:[#allocation6 + $0x1f0] sm:$0xff]  ;;  %v585_v32 = vld [vmem:[#allocation6 + $0x208] sm:$0xff] }
  0xd6   : > { %v587_v33 = vld [vmem:[#allocation6 + $0x218] sm:$0xff]  ;;  %v2045_v34 = vpack.c.bf16 %v582_v31, %v580_v30  ;;  %v584_v36 = vld [vmem:[#allocation6 + $0x200] sm:$0xff]  ;;  %v593_v46 = vld [vmem:[#allocation6 + $0x248] sm:$0xff] }
  0xd7   : > { %v2047_v35 = vpack.c.bf16 %v587_v33, %v585_v32  ;;  %v591_v39 = vld [vmem:[#allocation6 + $0x238] sm:$0xff]  ;;  %v516_v40 = vld [vmem:[#allocation3] sm:$0xff]  ;;  %v597_v52 = vld [vmem:[#allocation6 + $0x268] sm:$0xff] }
  0xd8   : > { %2006 = vmatpush1.bf16.msra.mxu0 %v2005_v37  ;;  %v586_v37 = vld [vmem:[#allocation6 + $0x210] sm:$0xff]  ;;  %v588_v43 = vld [vmem:[#allocation6 + $0x220] sm:$0xff]  ;;  %v595_v47 = vld [vmem:[#allocation6 + $0x258] sm:$0xff] }
  0xd9   : > { %2008 = vmatprep.subr.bf16.mxu0 %v2007_v38  ;;  %v589_v38 = vld [vmem:[#allocation6 + $0x228] sm:$0xff]  ;;  %v2049_v41 = vpack.c.bf16 %v586_v37, %v584_v36  ;;  %v2055_v49 = vpack.c.bf16 %v595_v47, %v593_v46  ;;  %v599_v53 = vld [vmem:[#allocation6 + $0x278] sm:$0xff]  ;;  %v608_v10 = vld [vmem:[#allocation6 + $0x2c0] sm:$0xff] }
  0xda   : > { %v2051_v42 = vpack.c.bf16 %v591_v39, %v589_v38  ;;  %v2059_v55 = vpack.c.bf16 %v599_v53, %v597_v52  ;;  %v601_v58 = vld [vmem:[#allocation6 + $0x288] sm:$0xff]  ;;  %v603_v59 = vld [vmem:[#allocation6 + $0x298] sm:$0xff]  ;;  %v610_v11 = vld [vmem:[#allocation6 + $0x2d0] sm:$0xff] }
  0xdb   : > { %v2063_v61 = vpack.c.bf16 %v603_v59, %v601_v58  ;;  %v605_v0 = vld [vmem:[#allocation6 + $0x2a8] sm:$0xff]  ;;  %v607_v1 = vld [vmem:[#allocation6 + $0x2b8] sm:$0xff]  ;;  %v2073_v14 = vpack.c.bf16 %v610_v11, %v608_v10  ;;  %v612_v16 = vld [vmem:[#allocation6 + $0x2e0] sm:$0xff] }
  0xdc   : > { %2010 = vmatpush1.bf16.msra.mxu0 %v2009_v44  ;;  %v590_v44 = vld [vmem:[#allocation6 + $0x230] sm:$0xff]  ;;  %v2067_v3 = vpack.c.bf16 %v607_v1, %v605_v0  ;;  %v609_v6 = vld [vmem:[#allocation6 + $0x2c8] sm:$0xff]  ;;  %v611_v7 = vld [vmem:[#allocation6 + $0x2d8] sm:$0xff] }
  0xdd   : > { %2012 = vmatprep.subr.bf16.mxu0 %v2011_v45  ;;  %v519_v45 = vld [vmem:[#allocation3 + $0x18] sm:$0xff]  ;;  %v2053_v48 = vpack.c.bf16 %v590_v44, %v588_v43  ;;  %v2071_v9 = vpack.c.bf16 %v611_v7, %v609_v6  ;;  %v614_v17 = vld [vmem:[#allocation6 + $0x2f0] sm:$0xff]  ;;  %v616_v22 = vld [vmem:[#allocation6 + $0x300] sm:$0xff] }
  0xde   : > { %v615_v13 = vld [vmem:[#allocation6 + $0x2f8] sm:$0xff]  ;;  %v2077_v20 = vpack.c.bf16 %v614_v17, %v612_v16  ;;  %v618_v23 = vld [vmem:[#allocation6 + $0x310] sm:$0xff]  ;;  %v625_v30 = vld [vmem:[#allocation6 + $0x348] sm:$0xff]  ;;  %v2610_v17 = vmov 0  }
  0xdf   : > { %v619_v19 = vld [vmem:[#allocation6 + $0x318] sm:$0xff]  ;;  %v2081_v26 = vpack.c.bf16 %v618_v23, %v616_v22  ;;  %v629_v36 = vld [vmem:[#allocation6 + $0x368] sm:$0xff]  ;;  %v632_v46 = vld [vmem:[#allocation6 + $0x380] sm:$0xff]  ;;  %1090 = vmatprep.mubr.bf16.mxu1 %v2610_v17  ;;  %v650_v22 = vlaneseq }
  0xe0   : > { %2014 = vmatpush1.bf16.msra.mxu0 %v2013_v50  ;;  %v592_v50 = vld [vmem:[#allocation6 + $0x240] sm:$0xff]  ;;  %v623_v25 = vld [vmem:[#allocation6 + $0x338] sm:$0xff]  ;;  %v634_v47 = vld [vmem:[#allocation6 + $0x390] sm:$0xff] }
  0xe1   : > { %2016 = vmatprep.subr.bf16.mxu0 %v2015_v51  ;;  %v594_v51 = vld [vmem:[#allocation6 + $0x250] sm:$0xff]  ;;  %v627_v31 = vld [vmem:[#allocation6 + $0x358] sm:$0xff]  ;;  %v636_v52 = vld [vmem:[#allocation6 + $0x3a0] sm:$0xff]  ;;  %v2951_v23 = vshrl.u32 %v650_v22, 7 }
  0xe2   : > { %v2057_v54 = vpack.c.bf16 %v594_v51, %v592_v50  ;;  %v2087_v33 = vpack.c.bf16 %v627_v31, %v625_v30  ;;  %v631_v37 = vld [vmem:[#allocation6 + $0x378] sm:$0xff]  ;;  %v2097_v50 = vpack.c.bf16 %v634_v47, %v632_v46  ;;  %v638_v53 = vld [vmem:[#allocation6 + $0x3b0] sm:$0xff]  ;;  %v640_v58 = vld [vmem:[#allocation6 + $0x3c0] sm:$0xff] }
  0xe3   : > { %v2091_v39 = vpack.c.bf16 %v631_v37, %v629_v36  ;;  %v635_v43 = vld [vmem:[#allocation6 + $0x398] sm:$0xff]  ;;  %v642_v59 = vld [vmem:[#allocation6 + $0x3d0] sm:$0xff]  ;;  %v644_v0 = vld [vmem:[#allocation6 + $0x3e0] sm:$0xff] }
  0xe4   : > { %2018 = vmatpush1.bf16.msra.mxu0 %v2017_v56  ;;  %v596_v56 = vld [vmem:[#allocation6 + $0x260] sm:$0xff]  ;;  %v646_v1 = vld [vmem:[#allocation6 + $0x3f0] sm:$0xff]  ;;  %v2227_v6 = vld [vmem:[#allocation11 + $0x24] ss:$16 sps:$4 sm:$0xff]  }
  0xe5   : > { %2020 = vmatprep.subr.bf16.mxu0 %v2019_v57  ;;  %v598_v57 = vld [vmem:[#allocation6 + $0x270] sm:$0xff]  ;;  %v2233_v10 = vld [vmem:[#allocation11 + $0x64] ss:$16 sps:$4 sm:$0xff]  }
  0xe6   : > { %v2061_v60 = vpack.c.bf16 %v598_v57, %v596_v56  ;;  %v2101_v56 = vpack.c.bf16 %v638_v53, %v636_v52  ;;  %v2229_v7 = vld [vmem:[#allocation11 + $0x20] ss:$16 sps:$4 sm:$0xff]   ;;  %v2242_v16 = vld [vmem:[#allocation11 + $0xc4] ss:$16 sps:$4 sm:$0xff]  }
  0xe7   : > { %v2235_v11 = vld [vmem:[#allocation11 + $0x60] ss:$16 sps:$4 sm:$0xff]  }
  0xe8   : > { %2022 = vmatpush1.bf16.msra.mxu0 %v2021_v62  ;;  %v600_v62 = vld [vmem:[#allocation6 + $0x280] sm:$0xff] }
  0xe9   : > { %2024 = vmatprep.subr.bf16.mxu0 %v2023_v63  ;;  %v602_v63 = vld [vmem:[#allocation6 + $0x290] sm:$0xff] }
  0xea   : > { %v2065_v2 = vpack.c.bf16 %v602_v63, %v600_v62  ;;  %v2105_v62 = vpack.c.bf16 %v642_v59, %v640_v58 }
  0xec   : > { %2026 = vmatpush1.bf16.msra.mxu0 %v2025_v4  ;;  %v604_v4 = vld [vmem:[#allocation6 + $0x2a0] sm:$0xff] }
  0xed   : > { %2028 = vmatprep.subr.bf16.mxu0 %v2027_v5  ;;  %v606_v5 = vld [vmem:[#allocation6 + $0x2b0] sm:$0xff] }
  0xee   : > { %v2069_v8 = vpack.c.bf16 %v606_v5, %v604_v4  ;;  %v2224_v4 = vld [vmem:[#allocation11 + $0x4] ss:$16 sps:$4 sm:$0xff]   ;;  %v2226_v5 = vld [vmem:[#allocation11] ss:$16 sps:$4 sm:$0xff]  }
  0xef   : > { %1058 = vmatprep.subr.bf16.mxu1 %v2224_v4  ;;  %v2253_v4 = vld [vmem:[#allocation11 + $0x2c] ss:$16 sps:$4 sm:$0xff]  }
  0xf0   : > { %2030 = vmatpush1.bf16.msra.mxu0 %v2029_v12  ;;  %v613_v12 = vld [vmem:[#allocation6 + $0x2e8] sm:$0xff]  ;;  %1059 = vmatpush1.bf16.msra.mxu1 %v2226_v5 }
  0xf1   : > { %2032 = vmatprep.subr.bf16.mxu0 %v2031_v15  ;;  %v2075_v15 = vpack.c.bf16 %v615_v13, %v613_v12  ;;  %1060 = vmatprep.subr.bf16.mxu1 %v2227_v6  ;;  %v2236_v12 = vld [vmem:[#allocation11 + $0x84] ss:$16 sps:$4 sm:$0xff]   ;;  %v2238_v13 = vld [vmem:[#allocation11 + $0x80] ss:$16 sps:$4 sm:$0xff]   ;;  %v2251_v5 = vld [vmem:[#allocation11 + $0x28] ss:$16 sps:$4 sm:$0xff]  }
  0xf2   : > { %v2256_v6 = vld [vmem:[#allocation11 + $0x4c] ss:$16 sps:$4 sm:$0xff]  }
  0xf4   : > { %2034 = vmatpush1.bf16.msra.mxu0 %v2033_v18  ;;  %v617_v18 = vld [vmem:[#allocation6 + $0x308] sm:$0xff]  ;;  %1061 = vmatpush1.bf16.msra.mxu1 %v2229_v7 }
  0xf5   : > { %2036 = vmatprep.subr.bf16.mxu0 %v2035_v21  ;;  %v2079_v21 = vpack.c.bf16 %v619_v19, %v617_v18  ;;  %v2244_v18 = vld [vmem:[#allocation11 + $0xc0] ss:$16 sps:$4 sm:$0xff]   ;;  %v2245_v19 = vld [vmem:[#allocation11 + $0xe4] ss:$16 sps:$4 sm:$0xff]   ;;  %v2254_v7 = vld [vmem:[#allocation11 + $0x48] ss:$16 sps:$4 sm:$0xff]  }
  0xf8   : > { %2038 = vmatpush1.bf16.msra.mxu0 %v2037_v24  ;;  %v621_v24 = vld [vmem:[#allocation6 + $0x328] sm:$0xff] }
  0xf9   : > { %2040 = vmatprep.subr.bf16.mxu0 %v2039_v27  ;;  %v2083_v27 = vpack.c.bf16 %v623_v25, %v621_v24  ;;  %v2954_v24 = vsub.s32 0, %v2951_v23  ;;  %v648_v25 = vld [vmem:[%s3127_s2] sm:$0x3] }
  0xfc   : > { %2042 = vmatpush1.bf16.msra.mxu0 %v2041_v28  ;;  %v620_v28 = vld [vmem:[#allocation6 + $0x320] sm:$0xff] }
  0xfd   : > { %2044 = vmatprep.subr.bf16.mxu0 %v2043_v29  ;;  %v622_v29 = vld [vmem:[#allocation6 + $0x330] sm:$0xff] }
  0xfe   : > { %v2085_v32 = vpack.c.bf16 %v622_v29, %v620_v28 }
 0x100   : > { %2046 = vmatpush1.bf16.msra.mxu0 %v2045_v34  ;;  %v624_v34 = vld [vmem:[#allocation6 + $0x340] sm:$0xff] }
 0x101   : > { %2048 = vmatprep.subr.bf16.mxu0 %v2047_v35  ;;  %v626_v35 = vld [vmem:[#allocation6 + $0x350] sm:$0xff] }
 0x102   : > { %v2089_v38 = vpack.c.bf16 %v626_v35, %v624_v34 }
 0x103   : > { %725 = vmatmul.mubr.f32.vlgmr.msra.gmra.mrb[0].mxu0 %v516_v40  ;;  %v628_v40 = vld [vmem:[#allocation6 + $0x360] sm:$0xff] }
 0x104   : > { %2050 = vmatpush1.bf16.msra.mxu0 %v2049_v41  ;;  %795 = vmatprep.mubr.f32.mxu0 %v519_v45  ;;  %v630_v41 = vld [vmem:[#allocation6 + $0x370] sm:$0xff] }
 0x105   : > { %2052 = vmatprep.subr.bf16.mxu0 %v2051_v42  ;;  %v633_v42 = vld [vmem:[#allocation6 + $0x388] sm:$0xff]  ;;  %v2093_v44 = vpack.c.bf16 %v630_v41, %v628_v40 }
 0x106   : > { %v2095_v45 = vpack.c.bf16 %v635_v43, %v633_v42 }
 0x108   : > { %2054 = vmatpush1.bf16.msra.mxu0 %v2053_v48  ;;  %v637_v48 = vld [vmem:[#allocation6 + $0x3a8] sm:$0xff] }
 0x109   : > { %2056 = vmatprep.subr.bf16.mxu0 %v2055_v49  ;;  %v639_v49 = vld [vmem:[#allocation6 + $0x3b8] sm:$0xff] }
 0x10a   : > { %v2099_v51 = vpack.c.bf16 %v639_v49, %v637_v48 }
 0x10c   : > { %2058 = vmatpush1.bf16.msra.mxu0 %v2057_v54  ;;  %v641_v54 = vld [vmem:[#allocation6 + $0x3c8] sm:$0xff] }
 0x10d   : > { %2060 = vmatprep.subr.bf16.mxu0 %v2059_v55  ;;  %v643_v55 = vld [vmem:[#allocation6 + $0x3d8] sm:$0xff] }
 0x10e   : > { %v2103_v57 = vpack.c.bf16 %v643_v55, %v641_v54 }
 0x110   : > { %2062 = vmatpush1.bf16.msra.mxu0 %v2061_v60  ;;  %v645_v60 = vld [vmem:[#allocation6 + $0x3e8] sm:$0xff] }
 0x111   : > { %2064 = vmatprep.subr.bf16.mxu0 %v2063_v61  ;;  %v647_v61 = vld [vmem:[#allocation6 + $0x3f8] sm:$0xff] }
 0x112   : > { %v2107_v63 = vpack.c.bf16 %v647_v61, %v645_v60  ;;  %v1857_v60 = vld [vmem:[#allocation8] ss:$0 sm:$0xff] }
 0x114   : > { %2066 = vmatpush1.bf16.msra.mxu0 %v2065_v2  ;;  %v2109_v2 = vpack.c.bf16 %v646_v1, %v644_v0 }
 0x115   : > { %2068 = vmatprep.subr.bf16.mxu0 %v2067_v3  ;;  %v518_v3 = vld [vmem:[#allocation3 + $0x10] sm:$0xff] }
 0x118   : > { %2070 = vmatpush1.bf16.msra.mxu0 %v2069_v8  ;;  %v2230_v8 = vld [vmem:[#allocation11 + $0x44] ss:$16 sps:$4 sm:$0xff]  }
 0x119   : > { %2072 = vmatprep.subr.bf16.mxu0 %v2071_v9  ;;  %v2232_v9 = vld [vmem:[#allocation11 + $0x40] ss:$16 sps:$4 sm:$0xff]   ;;  %1062 = vmatprep.subr.bf16.mxu1 %v2230_v8  ;;  %v2259_v8 = vld [vmem:[#allocation11 + $0x6c] ss:$16 sps:$4 sm:$0xff]  }
 0x11a   : > { %1063 = vmatpush1.bf16.msra.mxu1 %v2232_v9  ;;  %v2257_v9 = vld [vmem:[#allocation11 + $0x68] ss:$16 sps:$4 sm:$0xff]  }
 0x11b   : > { %1064 = vmatprep.subr.bf16.mxu1 %v2233_v10  ;;  %v2262_v10 = vld [vmem:[#allocation11 + $0x8c] ss:$16 sps:$4 sm:$0xff]  }
 0x11c   : > { %2074 = vmatpush1.bf16.msra.mxu0 %v2073_v14  ;;  %v2239_v14 = vld [vmem:[#allocation11 + $0xa4] ss:$16 sps:$4 sm:$0xff]  }
 0x11d   : > { %2076 = vmatprep.subr.bf16.mxu0 %v2075_v15  ;;  %v2241_v15 = vld [vmem:[#allocation11 + $0xa0] ss:$16 sps:$4 sm:$0xff]  }
 0x11e   : > { %1065 = vmatpush1.bf16.msra.mxu1 %v2235_v11  ;;  %v2260_v11 = vld [vmem:[#allocation11 + $0x88] ss:$16 sps:$4 sm:$0xff]  }
 0x11f   : > { %1066 = vmatprep.subr.bf16.mxu1 %v2236_v12  ;;  %v2265_v12 = vld [vmem:[#allocation11 + $0xac] ss:$16 sps:$4 sm:$0xff]  }
 0x120   : > { %2078 = vmatpush1.bf16.msra.mxu0 %v2077_v20  ;;  %v2247_v20 = vld [vmem:[#allocation11 + $0xe0] ss:$16 sps:$4 sm:$0xff]  }
 0x121   : > { %2080 = vmatprep.subr.bf16.mxu0 %v2079_v21  ;;  %v2250_v21 = vld [vmem:[#allocation11 + $0xc] ss:$16 sps:$4 sm:$0xff]  }
 0x122   : > { %1067 = vmatpush1.bf16.msra.mxu1 %v2238_v13  ;;  %v2263_v13 = vld [vmem:[#allocation11 + $0xa8] ss:$16 sps:$4 sm:$0xff]  }
 0x123   : > { %1068 = vmatprep.subr.bf16.mxu1 %v2239_v14  ;;  %v2268_v14 = vld [vmem:[#allocation11 + $0xcc] ss:$16 sps:$4 sm:$0xff]  }
 0x124   : > { %2082 = vmatpush1.bf16.msra.mxu0 %v2081_v26  ;;  %v2960_v26 = vsub.s32 1, %v2951_v23 }
 0x125   : > { %2084 = vmatprep.subr.bf16.mxu0 %v2083_v27  ;;  %v653_v27 = vrot.slane %v648_v25, %v2954_v24 }
 0x126   : > { %1069 = vmatpush1.bf16.msra.mxu1 %v2241_v15  ;;  %v657_v28 = vrot.slane %v648_v25, %v2960_v26  ;;  %v2266_v15 = vld [vmem:[#allocation11 + $0xc8] ss:$16 sps:$4 sm:$0xff]  }
 0x127   : > { %1070 = vmatprep.subr.bf16.mxu1 %v2242_v16  ;;  %v2271_v16 = vld [vmem:[#allocation11 + $0xec] ss:$16 sps:$4 sm:$0xff]  }
 0x128   : > { %2086 = vmatpush1.bf16.msra.mxu0 %v2085_v32 }
 0x129   : > { %2088 = vmatprep.subr.bf16.mxu0 %v2087_v33 }
 0x12a   : > { %1071 = vmatpush1.bf16.msra.mxu1 %v2244_v18 }
 0x12b   : > { %1072 = vmatprep.subr.bf16.mxu1 %v2245_v19 }
 0x12c   : > { %2090 = vmatpush1.bf16.msra.mxu0 %v2089_v38 }
 0x12d   : > { %2092 = vmatprep.subr.bf16.mxu0 %v2091_v39 }
 0x12e   : > { %1073 = vmatpush1.bf16.msra.mxu1 %v2247_v20 }
 0x12f   : > { %1099 = vmatprep.subr.bf16.mxu1 %v2250_v21 }
 0x130   : > { %2094 = vmatpush1.bf16.msra.mxu0 %v2093_v44 }
 0x131   : > { %2096 = vmatprep.subr.bf16.mxu0 %v2095_v45 }
 0x134   : > { %2098 = vmatpush1.bf16.msra.mxu0 %v2097_v50 }
 0x135   : > { %2100 = vmatprep.subr.bf16.mxu0 %v2099_v51 }
 0x138   : > { %2102 = vmatpush1.bf16.msra.mxu0 %v2101_v56 }
 0x139   : > { %2104 = vmatprep.subr.bf16.mxu0 %v2103_v57 }
 0x13c   : > { %2106 = vmatpush1.bf16.msra.mxu0 %v2105_v62  ;;  %v1858_v62 = vld [vmem:[#allocation9] ss:$0 sm:$0xff] }
 0x13d   : > { %2108 = vmatprep.subr.bf16.mxu0 %v2107_v63 }
 0x140   : > { %2110 = vmatpush1.bf16.msra.mxu0 %v2109_v2  ;;  %v2248_v2 = vld [vmem:[#allocation11 + $0x8] ss:$16 sps:$4 sm:$0xff]  }
 0x143   : > { %796 = vmatmul.mubr.f32.vlgmr.msra.gmra.mrb[0].mxu0 %v518_v3 }
 0x216   : > { %v797_v29 = vpop.f32.mrb[0].mxu0 }
 0x217   : > { %v2111_v30 = vadd.f32 %v797_v29, %v653_v27  ;;  %v799_v31 = vpop.f32.mrb[1].mxu0 }
 0x218   : > { %v2112_v32 = vadd.f32 %v799_v31, %v657_v28  ;;  %v2968_v28 = vld [vmem:[%s3131_s6] sm:$0xf] }
 0x219   : > { %v802_v33 = vrot.slane %v2111_v30, 4  ;;  %v810_v34 = vmul.f32 %v2111_v30, %v2111_v30  ;;  %v881_v29 = vrot.slane %v2968_v28, %v2954_v24 }
 0x21a   : > { %v840_v35 = vmul.f32 1.442695, %v2112_v32 }
 0x21b   : > { %v803_v36 = vadd.f32 %v2111_v30, %v802_v33  ;;  %v811_v37 = vrot.slane %v810_v34, 4 }
 0x21c   : > { %2272 = vpow2.f32 %v840_v35 }
 0x21d   : > { %v804_v38 = vrot.slane %v803_v36, 2  ;;  %v812_v39 = vadd.f32 %v811_v37, %v810_v34 }
 0x21f   : > { %v805_v40 = vadd.f32 %v804_v38, %v803_v36  ;;  %v813_v41 = vrot.slane %v812_v39, 2 }
 0x221   : > { %v806_v42 = vrot.slane %v805_v40, 1  ;;  %v814_v43 = vadd.f32 %v813_v41, %v812_v39 }
 0x223   : > { %v807_v44 = vadd.f32 %v806_v42, %v805_v40  ;;  %v815_v45 = vrot.slane %v814_v43, 1 }
 0x225   : > { %v809_v46 = vmul.f32 0.125, %v807_v44  ;;  %v816_v47 = vadd.f32 %v815_v45, %v814_v43 }
 0x226   : > { %v2273_v48 = vpop.eup %2272 }
 0x227   : > { %v818_v49 = vmul.f32 %v809_v46, %v809_v46  ;;  %v817_v50 = vmul.f32 0.125, %v816_v47  ;;  %v1298_v51 = vmul.f32 %v2273_v48, %v2273_v48  ;;  %v820_v58 = vsub.f32 %v2111_v30, %v809_v46 }
 0x228   : > { %v885_v30 = vrot.slane %v2968_v28, %v2960_v26 }
 0x229   : > { %v819_v52 = vsub.f32 %v817_v50, %v818_v49  ;;  %v1299_v53 = vadd.f32 %v1298_v51, %v810_v34 }
 0x22b   : > { %v821_v54 = vadd.f32 1e-05, %v819_v52  ;;  %v1893_v55 = vadd.f32 -1.0, %v1299_v53 }
 0x22d   : > { %2274 = vrsqrt.f32 %v821_v54  ;;  %v1301_v56 = vmul.f32 0.5, %v1893_v55 }
 0x22f   : > { %v1302_v57 = vsub.f32 %v1301_v56, %v2112_v32 }
 0x231   : > { %1303 = vadd.xlane.f32.xlu0 %v1302_v57 }
 0x237   : > { %v2275_v59 = vpop.eup %2274 }
 0x238   : > { %v823_v61 = vmul.f32 %v2275_v59, %v820_v58 }
 0x23a   : > { %v831_v63 = vmul.f32 %v1857_v60, %v823_v61 }
 0x23c   : > { %v839_v0 = vadd.f32 %v1858_v62, %v831_v63 }
 0x23e   : > { %v842_v1 = vadd.f32 %v2273_v48, %v839_v0 }
 0x240   : > { %v843_v3 = vpack.c.bf16 %v842_v1, %v842_v1 }
 0x242   : > { %1091 = vmatmul.mubr.bf16.vlgmr.msra.gmra.mrb[0].mxu1 %v843_v3 }
 0x243   : > { %1100 = vmatpush1.bf16.msra.mxu1 %v2248_v2  ;;  %1131 = vmatprep.mubr.bf16.mxu1 %v2610_v17  ;;  %v2269_v17 = vld [vmem:[#allocation11 + $0xe8] ss:$16 sps:$4 sm:$0xff]  }
 0x244   : > { %1101 = vmatprep.subr.bf16.mxu1 %v2253_v4 }
 0x247   : > { %1102 = vmatpush1.bf16.msra.mxu1 %v2251_v5 }
 0x248   : > { %1103 = vmatprep.subr.bf16.mxu1 %v2256_v6 }
 0x24b   : > { %1104 = vmatpush1.bf16.msra.mxu1 %v2254_v7 }
 0x24c   : > { %1105 = vmatprep.subr.bf16.mxu1 %v2259_v8 }
 0x24f   : > { %1106 = vmatpush1.bf16.msra.mxu1 %v2257_v9  ;;  %v2975_v9 = vsub.s32 2, %v2951_v23 }
 0x250   : > { %1107 = vmatprep.subr.bf16.mxu1 %v2262_v10  ;;  %v2978_v10 = vsub.s32 3, %v2951_v23 }
 0x253   : > { %1108 = vmatpush1.bf16.msra.mxu1 %v2260_v11  ;;  %v2983_v11 = vld [vmem:[%s3171_s11] sm:$0xf] }
 0x254   : > { %1109 = vmatprep.subr.bf16.mxu1 %v2265_v12  ;;  %v889_v12 = vrot.slane %v2968_v28, %v2975_v9  ;;  %v1229_v23 = vrot.slane %v2983_v11, %v2954_v24 }
 0x257   : > { %1110 = vmatpush1.bf16.msra.mxu1 %v2263_v13  ;;  %v893_v13 = vrot.slane %v2968_v28, %v2978_v10 }
 0x258   : > { %1111 = vmatprep.subr.bf16.mxu1 %v2268_v14  ;;  %v2992_v14 = vld [vmem:[%s3172_s13] sm:$0xf] }
 0x25b   : > { %1112 = vmatpush1.bf16.msra.mxu1 %v2266_v15 }
 0x25c   : > { %1113 = vmatprep.subr.bf16.mxu1 %v2271_v16 }
 0x25f   : > { %1114 = vmatpush1.bf16.msra.mxu1 %v2269_v17 }
 0x262   : > { %1132 = vmatmul.mubr.bf16.vlgmr.msra.gmra.mrb[4].mxu1 %v843_v3 }
 0x2be   : > { %v1304_v18 = vpop.xlane.xlu0 %1303 }
 0x2bf   : > { %v1305_v19 = vrot.slane %v1304_v18, 4 }
 0x2c1   : > { %v1306_v20 = vadd.f32 %v1305_v19, %v1304_v18  ;;  %v1233_v19 = vrot.slane %v2983_v11, %v2960_v26 }
 0x2c3   : > { %v1307_v21 = vrot.slane %v1306_v20, 2 }
 0x2c5   : > { %v1308_v22 = vadd.f32 %v1307_v21, %v1306_v20 }
 0x2c7   : > { %v1309_v25 = vrot.slane %v1308_v22, 1 }
 0x2c9   : > { %v1310_v27 = vadd.f32 %v1309_v25, %v1308_v22 }
 0x2cb   : > { %1312 = vst.msk [vmem:[#allocation15] sm:$0x1] %vm1311_vm0, %v1310_v27  ;;  %v1255_v27 = vrot.slane %v2992_v14, %v2954_v24 }
 0x315   : > { %v1092_v31 = vpop.f32.mrb[0].mxu1 }
 0x316   : > { %v1093_v32 = vadd.f32 %v1092_v31, %v881_v29  ;;  %v1094_v33 = vpop.f32.mrb[1].mxu1  ;;  %v1259_v31 = vrot.slane %v2992_v14, %v2960_v26 }
 0x317   : > { %v1095_v34 = vadd.f32 %v1094_v33, %v885_v30  ;;  %v1096_v35 = vpop.f32.mrb[2].mxu1 }
 0x318   : > { %v1140_v36 = vrot.slane %v1093_v32, 4  ;;  %v1168_v37 = vmul.f32 %v1093_v32, %v1093_v32  ;;  %v1097_v38 = vpop.f32.mrb[3].mxu1 }
 0x319   : > { %v1146_v39 = vrot.slane %v1095_v34, 4  ;;  %v1169_v40 = vmul.f32 %v1095_v34, %v1095_v34 }
 0x31a   : > { %v1141_v41 = vadd.f32 %v1140_v36, %v1093_v32  ;;  %v1172_v42 = vrot.slane %v1168_v37, 4 }
 0x31b   : > { %v1147_v43 = vadd.f32 %v1146_v39, %v1095_v34  ;;  %v1178_v44 = vrot.slane %v1169_v40, 4 }
 0x31c   : > { %v1142_v45 = vrot.slane %v1141_v41, 2  ;;  %v1173_v46 = vadd.f32 %v1172_v42, %v1168_v37 }
 0x31d   : > { %v1148_v47 = vrot.slane %v1147_v43, 2  ;;  %v1179_v48 = vadd.f32 %v1178_v44, %v1169_v40 }
 0x31e   : > { %v1143_v49 = vadd.f32 %v1142_v45, %v1141_v41  ;;  %v1174_v50 = vrot.slane %v1173_v46, 2 }
 0x31f   : > { %v1149_v51 = vadd.f32 %v1148_v47, %v1147_v43  ;;  %v1180_v52 = vrot.slane %v1179_v48, 2 }
 0x320   : > { %v1144_v53 = vrot.slane %v1143_v49, 1  ;;  %v1175_v54 = vadd.f32 %v1174_v50, %v1173_v46 }
 0x321   : > { %v1150_v55 = vrot.slane %v1149_v51, 1  ;;  %v1181_v56 = vadd.f32 %v1180_v52, %v1179_v48 }
 0x322   : > { %v1145_v57 = vadd.f32 %v1144_v53, %v1143_v49  ;;  %v1176_v58 = vrot.slane %v1175_v54, 1 }
 0x323   : > { %v1151_v59 = vadd.f32 %v1150_v55, %v1149_v51  ;;  %v1182_v60 = vrot.slane %v1181_v56, 1 }
 0x324   : > { %v1164_v61 = vmul.f32 0.125, %v1145_v57  ;;  %v1177_v62 = vadd.f32 %v1176_v58, %v1175_v54 }
 0x325   : > { %v1165_v63 = vmul.f32 0.125, %v1151_v59  ;;  %v1183_v0 = vadd.f32 %v1182_v60, %v1181_v56 }
 0x326   : > { %v1196_v1 = vmul.f32 0.125, %v1177_v62  ;;  %v1200_v2 = vmul.f32 %v1164_v61, %v1164_v61  ;;  %v1208_v15 = vsub.f32 %v1093_v32, %v1164_v61 }
 0x327   : > { %v1197_v3 = vmul.f32 0.125, %v1183_v0  ;;  %v1201_v4 = vmul.f32 %v1165_v63, %v1165_v63  ;;  %v1209_v18 = vsub.f32 %v1095_v34, %v1165_v63 }
 0x328   : > { %v1204_v5 = vsub.f32 %v1196_v1, %v1200_v2 }
 0x329   : > { %v1205_v6 = vsub.f32 %v1197_v3, %v1201_v4 }
 0x32a   : > { %v1212_v7 = vadd.f32 1e-05, %v1204_v5 }
 0x32b   : > { %v1213_v8 = vadd.f32 1e-05, %v1205_v6 }
 0x32c   : > { %2276 = vrsqrt.f32 %v1212_v7 }
 0x32d   : > { %2278 = vrsqrt.f32 %v1213_v8 }
 0x335   : > { %v1133_v16 = vpop.f32.mrb[4].mxu1 }
 0x336   : > { %v2277_v17 = vpop.eup %2276  ;;  %v2998_v20 = vadd.f32 %v1133_v16, %v889_v12  ;;  %v1135_v21 = vpop.f32.mrb[5].mxu1 }
 0x337   : > { %v2279_v22 = vpop.eup %2278  ;;  %v1220_v25 = vmul.f32 %v2277_v17, %v1208_v15  ;;  %v1136_v28 = vadd.f32 %v1135_v21, %v893_v13  ;;  %v1137_v29 = vpop.f32.mrb[6].mxu1  ;;  %v1237_v15 = vrot.slane %v2983_v11, %v2975_v9  ;;  %v1241_v17 = vrot.slane %v2983_v11, %v2978_v10 }
 0x338   : > { %v1221_v30 = vmul.f32 %v2279_v22, %v1209_v18  ;;  %v1152_v32 = vrot.slane %v2998_v20, 4  ;;  %v1170_v33 = vmul.f32 %v2998_v20, %v2998_v20  ;;  %v1138_v34 = vpop.f32.mrb[7].mxu1  ;;  %v1263_v21 = vrot.slane %v2992_v14, %v2975_v9 }
 0x339   : > { %v1246_v35 = vmul.f32 %v1229_v23, %v1220_v25  ;;  %v1158_v36 = vrot.slane %v1136_v28, 4  ;;  %v1171_v37 = vmul.f32 %v1136_v28, %v1136_v28  ;;  %v1267_v25 = vrot.slane %v2992_v14, %v2978_v10 }
 0x33a   : > { %v1247_v38 = vmul.f32 %v1233_v19, %v1221_v30  ;;  %v1153_v39 = vadd.f32 %v1152_v32, %v2998_v20  ;;  %v1184_v40 = vrot.slane %v1170_v33, 4 }
 0x33b   : > { %v1272_v24 = vadd.f32 %v1255_v27, %v1246_v35  ;;  %v1159_v41 = vadd.f32 %v1158_v36, %v1136_v28  ;;  %v1190_v42 = vrot.slane %v1171_v37, 4 }
 0x33c   : > { %v1273_v43 = vadd.f32 %v1259_v31, %v1247_v38  ;;  %v1154_v44 = vrot.slane %v1153_v39, 2  ;;  %v1185_v45 = vadd.f32 %v1184_v40, %v1170_v33 }
 0x33d   : > { %v1276_v26 = vmax.f32 %v1272_v24, 0.0  ;;  %v1160_v46 = vrot.slane %v1159_v41, 2  ;;  %v1191_v47 = vadd.f32 %v1190_v42, %v1171_v37 }
 0x33e   : > { %v1277_v48 = vmax.f32 %v1273_v43, 0.0  ;;  %v1155_v49 = vadd.f32 %v1154_v44, %v1153_v39  ;;  %v1186_v50 = vrot.slane %v1185_v45, 2 }
 0x33f   : > { %v1161_v51 = vadd.f32 %v1160_v46, %v1159_v41  ;;  %v1192_v52 = vrot.slane %v1191_v47, 2 }
 0x340   : > { %v1937_v53 = vpack.c.bf16 %v1277_v48, %v1276_v26  ;;  %v1156_v54 = vrot.slane %v1155_v49, 1  ;;  %v1187_v55 = vadd.f32 %v1186_v50, %v1185_v45 }
 0x341   : > { %v1162_v56 = vrot.slane %v1161_v51, 1  ;;  %v1193_v57 = vadd.f32 %v1192_v52, %v1191_v47 }
 0x342   : > { %1296 = vst [vmem:[#allocation2] sm:$0xff] %v1937_v53  ;;  %v1157_v58 = vadd.f32 %v1156_v54, %v1155_v49  ;;  %v1188_v59 = vrot.slane %v1187_v55, 1 }
 0x343   : > { %v1163_v60 = vadd.f32 %v1162_v56, %v1161_v51  ;;  %v1194_v61 = vrot.slane %v1193_v57, 1 }
 0x344   : > { %v1166_v62 = vmul.f32 0.125, %v1157_v58  ;;  %v1189_v63 = vadd.f32 %v1188_v59, %v1187_v55 }
 0x345   : > { %v1167_v0 = vmul.f32 0.125, %v1163_v60  ;;  %v1195_v1 = vadd.f32 %v1194_v61, %v1193_v57 }
 0x346   : > { %v1198_v2 = vmul.f32 0.125, %v1189_v63  ;;  %v1202_v3 = vmul.f32 %v1166_v62, %v1166_v62  ;;  %v1210_v13 = vsub.f32 %v2998_v20, %v1166_v62 }
 0x347   : > { %v1199_v4 = vmul.f32 0.125, %v1195_v1  ;;  %v1203_v5 = vmul.f32 %v1167_v0, %v1167_v0  ;;  %v1211_v16 = vsub.f32 %v1136_v28, %v1167_v0 }
 0x348   : > { %v1206_v6 = vsub.f32 %v1198_v2, %v1202_v3 }
 0x349   : > { %v1207_v7 = vsub.f32 %v1199_v4, %v1203_v5 }
 0x34a   : > { %v1214_v8 = vadd.f32 1e-05, %v1206_v6 }
 0x34b   : > { %v1215_v12 = vadd.f32 1e-05, %v1207_v7 }
 0x34c   : > { %2280 = vrsqrt.f32 %v1214_v8 }
 0x34d   : > { %2282 = vrsqrt.f32 %v1215_v12 }
 0x356   : > { %v2281_v23 = vpop.eup %2280 }
 0x357   : > { %v2283_v18 = vpop.eup %2282  ;;  %v1222_v19 = vmul.f32 %v2281_v23, %v1210_v13 }
 0x358   : > { %v1223_v22 = vmul.f32 %v2283_v18, %v1211_v16 }
 0x359   : > { %v1248_v27 = vmul.f32 %v1237_v15, %v1222_v19 }
 0x35a   : > { %v1249_v29 = vmul.f32 %v1241_v17, %v1223_v22 }
 0x35b   : > { %v1274_v20 = vadd.f32 %v1263_v21, %v1248_v27 }
 0x35c   : > { %v1275_v30 = vadd.f32 %v1267_v25, %v1249_v29 }
 0x35d   : > { %v1278_v31 = vmax.f32 %v1274_v20, 0.0 }
 0x35e   : > { %v1279_v32 = vmax.f32 %v1275_v30, 0.0 }
 0x360   : > { %v1938_v33 = vpack.c.bf16 %v1279_v32, %v1278_v31 }
 0x362   : > { %1297 = vst [vmem:[#allocation2 + $0x8] sm:$0xff] %v1938_v33 }
 0x363 PF: > { %v2284_v9 = vld [vmem:[%s2931_s18 + $0x40] sm:$0xff]   ;;  %v2288_v28 = vld [vmem:[%s2931_s18 + $0x48] sm:$0xff]   ;;  %v2292_v37 = vld [vmem:[%s2931_s18 + $0x50] sm:$0xff]   ;;  %s2611_s27 = smov [#allocation15]   ;;  %p3173_p2 = scmp.eq.s32.totalorder %s2699_s25, 3 }
 0x364   : > { %v2285_v10 = vld [vmem:[%s2931_s18 + $0xc0] sm:$0xff]   ;;  %1939 = vmatprep.subr.bf16.mxu0 %v2284_v9  ;;  %v2289_v34 = vld [vmem:[%s2931_s18 + $0xc8] sm:$0xff]   ;;  %v2293_v38 = vld [vmem:[%s2931_s18 + $0xd0] sm:$0xff]   ;;  %s1698_s26 = sshll.u32 %s2611_s27, 4  ;;  %s1699_s26 = int_to_ptr.vmem [resolvable:$true] %s1698_s26 }
 0x365   : > { %v2286_v11 = vld [vmem:[%s2931_s18] sm:$0xff]   ;;  %1961 = vmatprep.subr.bf16.mxu1 %v2285_v10  ;;  %v2290_v35 = vld [vmem:[%s2931_s18 + $0x8] sm:$0xff]   ;;  %v2294_v39 = vld [vmem:[%s2931_s18 + $0x10] sm:$0xff]   ;;  %s2490_s28 = scalar_lea.vmem %s1699_s26, 16  ;;  %p2497_p0 = scmp.lt.s32.totalorder %s1699_s26, %s1699_s26 }
 0x366   : > { %v2287_v14 = vld [vmem:[%s2931_s18 + $0x80] sm:$0xff]   ;;  %1940 = vmatpush3.bf16.msra.mxu0 %v2286_v11  ;;  %v2291_v36 = vld [vmem:[%s2931_s18 + $0x88] sm:$0xff]   ;;  %v2295_v40 = vld [vmem:[%s2931_s18 + $0x90] sm:$0xff]   ;;  %p2491_p1 = scmp.ne.s32.totalorder %s1699_s26, %s2490_s28 }
 0x367   : > { %1962 = vmatpush3.bf16.msra.mxu1 %v2287_v14  ;;  %1941 = vmatprep.subr.bf16.mxu0 %v2288_v28  ;;  %v2296_v24 = vld [vmem:[%s2931_s18 + $0x58] sm:$0xff]   ;;  %v2300_v44 = vld [vmem:[%s2931_s18 + $0x60] sm:$0xff]   ;;  %v2304_v47 = vld [vmem:[%s2931_s18 + $0x68] sm:$0xff]  }
 0x368   : > { %1963 = vmatprep.subr.bf16.mxu1 %v2289_v34  ;;  %v2297_v41 = vld [vmem:[%s2931_s18 + $0xd8] sm:$0xff]   ;;  %v2301_v45 = vld [vmem:[%s2931_s18 + $0xe0] sm:$0xff]   ;;  %v2305_v48 = vld [vmem:[%s2931_s18 + $0xe8] sm:$0xff]   ;;  %p2492_p13 = pnand %p2491_p1, %p3173_p2 }
 0x369   : > { %v2298_v42 = vld [vmem:[%s2931_s18 + $0x18] sm:$0xff]   ;;  %v2302_v26 = vld [vmem:[%s2931_s18 + $0x20] sm:$0xff]   ;;  %v2306_v49 = vld [vmem:[%s2931_s18 + $0x28] sm:$0xff]  }
 0x36a   : > { %1942 = vmatpush3.bf16.msra.mxu0 %v2290_v35  ;;  %v2299_v43 = vld [vmem:[%s2931_s18 + $0x98] sm:$0xff]   ;;  %v2303_v46 = vld [vmem:[%s2931_s18 + $0xa0] sm:$0xff]   ;;  %v2307_v50 = vld [vmem:[%s2931_s18 + $0xa8] sm:$0xff]   ;;  %p2493_p10 = pneg %p2492_p13 }
 0x36b   : > { %1964 = vmatpush3.bf16.msra.mxu1 %v2291_v36  ;;  %1943 = vmatprep.subr.bf16.mxu0 %v2292_v37  ;;  %v2308_v51 = vld [vmem:[%s2931_s18 + $0x70] sm:$0xff]   ;;  %v2312_v55 = vld [vmem:[%s2931_s18 + $0x78] sm:$0xff]  }
 0x36c   : > { %1965 = vmatprep.subr.bf16.mxu1 %v2293_v38  ;;  %v2309_v52 = vld [vmem:[%s2931_s18 + $0xf0] sm:$0xff]   ;;  %v2313_v56 = vld [vmem:[%s2931_s18 + $0xf8] sm:$0xff]  }
 0x36d   : > { %v2310_v53 = vld [vmem:[%s2931_s18 + $0x30] sm:$0xff]   ;;  %v2314_v57 = vld [vmem:[%s2931_s18 + $0x38] sm:$0xff]  }
 0x36e   : > { %1944 = vmatpush3.bf16.msra.mxu0 %v2294_v39  ;;  %v2311_v54 = vld [vmem:[%s2931_s18 + $0xb0] sm:$0xff]   ;;  %v2315_v58 = vld [vmem:[%s2931_s18 + $0xb8] sm:$0xff]   ;;  %s2496_s18 = scalar_lea.vmem %s1699_s26, 32 }
 0x36f   : > { %1966 = vmatpush3.bf16.msra.mxu1 %v2295_v40  ;;  %1945 = vmatprep.subr.bf16.mxu0 %v2296_v24  ;;  %v1313_v59 = vld [vmem:[#allocation2] sm:$0xff]  ;;  %v1314_v60 = vld [vmem:[#allocation2 + $0x8] sm:$0xff]  ;;  %p2498_p4 = scmp.lt.s32.totalorder %s2496_s18, %s2490_s28 }
 0x370   : > { %1967 = vmatprep.subr.bf16.mxu1 %v2297_v41  ;;  %v1895_v61 = vcombine.low %v1313_v59, %v1313_v59  ;;  %v1896_v62 = vcombine.high %v1313_v59, %v1313_v59  ;;  %v1897_v63 = vcombine.low %v1314_v60, %v1314_v60  ;;  %v1898_v0 = vcombine.high %v1314_v60, %v1314_v60 }
 0x371   : > { %p2499_p9 = por %p2498_p4, %p2497_p0 }
 0x372   : > { %1946 = vmatpush3.bf16.msra.mxu0 %v2298_v42  ;;  %1624 = vmatprep.mubr.bf16.mxu0 %v1896_v62 }
 0x373   : > { %1968 = vmatpush3.bf16.msra.mxu1 %v2299_v43  ;;  %1947 = vmatprep.subr.bf16.mxu0 %v2300_v44  ;;  %p2500_p6 = pnand %p2499_p9, %p2493_p10 }
 0x374   : > { %1969 = vmatprep.subr.bf16.mxu1 %v2301_v45  ;;  %1664 = vmatprep.mubr.bf16.mxu1 %v1898_v0 }
 0x376   : > { %1948 = vmatpush3.bf16.msra.mxu0 %v2302_v26 }
 0x377   : > { %1970 = vmatpush3.bf16.msra.mxu1 %v2303_v46  ;;  %1949 = vmatprep.subr.bf16.mxu0 %v2304_v47 }
 0x378   : > { %1971 = vmatprep.subr.bf16.mxu1 %v2305_v48 }
 0x37a   : > { %1950 = vmatpush3.bf16.msra.mxu0 %v2306_v49 }
 0x37b   : > { %1972 = vmatpush3.bf16.msra.mxu1 %v2307_v50  ;;  %1951 = vmatprep.subr.bf16.mxu0 %v2308_v51 }
 0x37c   : > { %1973 = vmatprep.subr.bf16.mxu1 %v2309_v52 }
 0x37e   : > { %1952 = vmatpush3.bf16.msra.mxu0 %v2310_v53 }
 0x37f   : > { %1974 = vmatpush3.bf16.msra.mxu1 %v2311_v54  ;;  %1953 = vmatprep.subr.bf16.mxu0 %v2312_v55 }
 0x380   : > { %1975 = vmatprep.subr.bf16.mxu1 %v2313_v56 }
 0x382   : > { %1954 = vmatpush3.bf16.msra.mxu0 %v2314_v57 }
 0x383   : > { %1976 = vmatpush3.bf16.msra.mxu1 %v2315_v58 }
 0x385   : > { %1625 = vmatmul.mubr.bf16.vlgmr.msra.gmra.mrb[0].mxu0 %v1895_v61 }
 0x386   : > { %1665 = vmatmul.mubr.bf16.vlgmr.msra.gmra.mrb[0].mxu1 %v1897_v63 }
 0x387   : > { %2503 = shalt.err (!%p2500_p6)
}
 0x388   : > { %s3174_s12 = sld [smem:[#allocation28_spill]]  ;;  %p3175_p11 = pmov %p3173_p2 }
 0x38e   : > { %s2504_s11 = scalar_lea.hbm %s3174_s12, 16 }
 0x38f   : > { %p2505_p8 = scmp.ne.s32.totalorder %s3174_s12, %s2504_s11  ;;  %p2510_p12 = scmp.lt.u32.totalorder %s2504_s11, %s3174_s12 }
 0x391   : > { %p2506_p3 = pnand %p2505_p8, %p3175_p11 }
 0x393   : > { %p2507_p7 = pneg %p2506_p3 }
 0x395   : > { %p2512_p1 = pnand %p2510_p12, %p2507_p7 }
 0x397   : > { %2515 = shalt.err (!%p2512_p1)
}
 0x398   : > { %2139 = dma.vmem_to_hbm [thread:$0]  (%p3173_p2), %s1699_s26, 16, %s3174_s12, [#allocation16]   ;;  %v1894_v3 = vld [vmem:[%s510_s17] ss:$0 sm:$0xff] }
 0x399   : > { %s1932_s11 = sshll.u32 %s2699_s25, 7  ;;  %s1687_s26 = sshll.u32 %s2946_s16, 4  ;;  %s3079_s26 = int_to_ptr.vmem [resolvable:$true] %s1687_s26 }
 0x39a   : > { %s3176_s13 = sld [smem:[#allocation27_spill]]  ;;  %s1674_s17 = scalar_lea.sflag [#allocation5], %s2927_s29 }
 0x39b   : > { %s2516_s27 = scalar_lea.vmem %s3079_s26, 128  ;;  %s2612_s28 = smov [#allocation14]  }
 0x39c   : > { %p2517_p13 = scmp.ne.s32.totalorder %s3079_s26, %s2516_s27  ;;  %s2520_s18 = sshll.u32 %s2612_s28, 4  ;;  %s2521_s18 = int_to_ptr.vmem [resolvable:$false] %s2520_s18 }
 0x39d   : > { %s2522_s14 = scalar_lea.vmem %s2521_s18, 256  ;;  %p2523_p4 = scmp.lt.s32.totalorder %s3079_s26, %s2521_s18 }
 0x39e   : > { %p2518_p10 = pnand %p2517_p13, %p2866_p5  ;;  %p2524_p9 = scmp.lt.s32.totalorder %s2522_s14, %s2516_s27 }
 0x3a0   : > { %s3077_s8 = scalar_lea.hbm %s3176_s13, %s1932_s11  ;;  %p2519_p0 = pneg %p2518_p10 }
 0x3a1   : > { %p2525_p6 = por %p2524_p9, %p2523_p4 }
 0x3a3   : > { %p2526_p8 = pnand %p2525_p6, %p2519_p0 }
 0x458   : > { %v1955_v1 = vpop.f32.mrb[0].mxu0 }
 0x459   : > { %v1977_v2 = vpop.f32.mrb[0].mxu1  ;;  %v1956_v4 = vpop.f32.mrb[1].mxu0 }
 0x45a   : > { %v1978_v5 = vpop.f32.mrb[1].mxu1  ;;  %v1957_v6 = vadd.f32 %v1956_v4, %v1955_v1  ;;  %v1958_v8 = vpop.f32.mrb[2].mxu0 }
 0x45b   : > { %v1979_v7 = vadd.f32 %v1978_v5, %v1977_v2  ;;  %v1980_v12 = vpop.f32.mrb[2].mxu1  ;;  %v1959_v13 = vpop.f32.mrb[3].mxu0 }
 0x45c   : > { %v1981_v15 = vpop.f32.mrb[3].mxu1  ;;  %v1627_v23 = vadd.f32 %v1957_v6, %v1894_v3 }
 0x45e   : > { %v1667_v16 = vadd.f32 %v1979_v7, %v1627_v23 }
 0x460   : > { %1672 = vst [vmem:[%s2946_s16] sm:$0xff] %v1667_v16 }
 0x461   : > { %2529 = shalt.err (!%p2526_p8)
}
 0x462   : > { %s2530_s29 = scalar_lea.hbm %s3077_s8, 128  ;;  %s2534_s11 = scalar_lea.hbm %s3176_s13, 512 }
 0x463   : > { %p2531_p11 = scmp.ne.s32.totalorder %s3077_s8, %s2530_s29  ;;  %p2535_p12 = scmp.lt.u32.totalorder %s3077_s8, %s3176_s13 }
 0x464   : > { %p2536_p1 = scmp.lt.u32.totalorder %s2534_s11, %s2530_s29  ;;  %p2538_p13 = scmp.lt.u32.totalorder %s2530_s29, %s3077_s8 }
 0x465   : > { %p2532_p3 = pnand %p2531_p11, %p2866_p5 }
 0x466   : > { %p2537_p2 = por %p2536_p1, %p2535_p12 }
 0x467   : > { %p2533_p7 = pneg %p2532_p3 }
 0x468   : > { %p2539_p10 = por %p2538_p13, %p2537_p2 }
 0x46a   : > { %p2540_p0 = pnand %p2539_p10, %p2533_p7 }
 0x46c   : > { %2543 = shalt.err (!%p2540_p0)
}
 0x46d   : > { %2137 = dma.vmem_to_hbm [thread:$0]  (%p2866_p5), %s3079_s26, 128, %s3077_s8, %s1674_s17  }
 0x46e   : > { %p3177_p4 = scmp.eq.s32.totalorder %s2699_s25, 3 }
 0x470   : > { %2577 = dma.done.wait (%p3177_p4), [#allocation16], 16   ;;  %p3178_p9 = pmov %p3177_p4 }
 0x472   : > { %2579 = vsyncadd (%p3178_p9), [#allocation16], 4294967280 }
 0x473 PF: > { %s3179_s27 = sld [smem:[#allocation23_spill]]  ;;  %s3180_s28 = sld [smem:[#allocation24_spill]] }
 0x474   : > { %p2180_p6 = scmp.ge.s32.totalorder %s2598_s24, 2 }
 0x479   : > { %s1714_s18 = sand.u32 1, %s3179_s27   ;;  %p3181_p8 = scmp.ne.s32.totalorder %s3180_s28, 0 }
 0x47a   : > { %s1715_s14 = scalar_lea.sflag [#allocation5], %s1714_s18 }
 0x47b   : > { %p2164_p11 = pnand %p2180_p6, %p3181_p8 }
 0x47d   : > { %2581 = dma.done.wait (!%p2164_p11), %s1715_s14, 128  }
 0x47e   : > { %2583 = vsyncadd (!%p2164_p11), %s1715_s14, 4294967168  ;;  %s3182_s15 = smov %s2852_s21  ;;  %p30_p5 = scmp.ge.s32.totalorder %s2852_s21, 6  }
 0x47f   : > { %s3183_s21 = smov %s2590_s22  ;;  %s3184_s22 = smov %s2594_s23 }
 0x480   : > { %s3185_s23 = smov %s2862_s19  ;;  %s3186_s24 = smov %s3182_s15 }
 0x481   :  { %32 = sbr.rel (!%p30_p5) target bundleno = 14 (0xe), region = 145 }
 0x488   :  { %1720 = vsyncpa [#allocation4], 1 }
 0x489   :  { %1722 = vsyncpa [#allocation4 + $0x1], 1 }
 0x48a   :  { %1723 = vsyncpa [#allocation7], 1 }
 0x48b   :  { %1724 = vsyncpa [#allocation10], 1 }
 0x48c   :  { %1725 = vsyncpa [#allocation13], 1 }
 0x48d   :  { %1727 = vsyncpa [#allocation13 + $0x1], 1 }
 0x48e   :  { %1728 = vsyncpa [#allocation5], 1 }
 0x48f   :  { %1730 = vsyncpa [#allocation5 + $0x1], 1 }
 0x490   :  { %1731 = vsyncpa [#allocation16], 1 }

</bundles_post_ra>
